<compile_context>
chip_gen: v5e
topology: v5e:2x2
jax: 0.10.0
libtpu: 0.0.40
codegen_flags: <defaults>
</compile_context>

<pallas_src>
import jax
import jax.numpy as jnp
from jax import lax
from jax.experimental import pallas as pl
from jax.experimental.pallas import tpu as pltpu


def _round_up(x, m):
    return ((x + m - 1) // m) * m


def lstm_ias_kernel(maxlen_ref, x_ref, lens_ref, wih_ref, bias_ref, whh_ref,
                    wslot_ref, bslot_ref, wint_ref, bint_ref,
                    slots_ref, intent_ref,
                    xw_scr, enc_scr, state_scr):
    TB = x_ref.shape[0]            # T * B_pad rows, time-major flattened
    G = whh_ref.shape[1]           # 4 * H (lane-dense gate width)
    H = G // 4
    BP = state_scr.shape[0]        # padded batch (multiple of 8 sublanes)
    T = TB // BP

    # (1) Input projections for every timestep in one lane-dense MXU pass:
    #     (T*BP, E) @ (E, 4H) + (b_ih + b_hh)  ->  (T*BP, 4H). No reshapes.
    xw_scr[...] = jnp.dot(x_ref[...], wih_ref[...],
                          preferred_element_type=jnp.float32) + bias_ref[...]

    # encoded outputs pre-zeroed so steps skipped past max_len stay zero
    enc_scr[...] = jnp.zeros_like(enc_scr)
    # packed state layout: lanes [0:H) = h, lanes [H:2H) = c, rest don't-care
    state_scr[...] = jnp.zeros_like(state_scr)

    maxlen = maxlen_ref[0]
    # loop-invariant recurrent weight (pre-transposed & zero-padded in wrapper)
    whh = whh_ref[...]
    # hoisted per-row sequence lengths (B_pad, 4H) -> per-step VPU compare only
    lens = lens_ref[...]
    # loop-invariant lane-group selector for packing [h | c | ...]
    lane_h = lax.broadcasted_iota(jnp.int32, (BP, G), 1) < H

    def step(t, carry):
        @pl.when(t < maxlen)                     # skip fully-padded timesteps
        def _():
            row = pl.multiple_of(t * BP, BP)     # 8-sublane aligned slice start
            xw = xw_scr[pl.ds(row, BP), :]                       # (BP, 4H)
            state = state_scr[...]                               # (BP, 4H) [h|c|..]
            gates = xw + jnp.dot(state, whh,
                                 preferred_element_type=jnp.float32)
            # Full-vreg activations (EUP); gate alignment via lane rolls (XLU).
            # PyTorch gate order in lanes: [ i | f | g | o ]
            sg = jax.nn.sigmoid(gates)
            tg = jnp.tanh(gates)
            sg_rH = pltpu.roll(sg, H, 1)          # lanes[0:H)=sig(o), [H:2H)=sig(i)
            # lanes [H:2H): i*g + f*c_old
            c_full = sg_rH * pltpu.roll(tg, 3 * H, 1) + sg * state
            # lanes [0:H):  o * tanh(c_new)
            h_full = sg_rH * pltpu.roll(jnp.tanh(c_full), 3 * H, 1)
            # pack [h | c | junk]; junk lanes only ever contract against zero
            # weight rows, so no extra zeroing select on the state chain.
            hc_new = jnp.where(lane_h, h_full, c_full)
            m = t < lens                          # (BP, 4H) VPU compare, no load
            # pack_padded_sequence semantics: freeze state past seq_lengths[b],
            # zero the padded encoder outputs.
            state_scr[...] = jnp.where(m, hc_new, state)
            enc_scr[pl.ds(row, BP), :] = jnp.where(m, h_full, 0.0)
        return carry

    lax.fori_loop(0, T, step, 0, unroll=True)

    # (2) Slot logits for every timestep — lane-dense (T*BP, S_pad) store.
    #     Padded positions (enc row == 0) get exactly the bias, like PyTorch.
    slots_ref[...] = jnp.dot(enc_scr[...], wslot_ref[...],
                             preferred_element_type=jnp.float32) + bslot_ref[...]
    # (3) Intent logits from the last valid hidden state (frozen h lanes; the
    #     zero-padded W_int rows kill the c / junk lanes of the state).
    intent_ref[...] = jnp.dot(state_scr[...], wint_ref[...],
                              preferred_element_type=jnp.float32) + bint_ref[...]


def model_ias_forward(params, utterance, seq_lengths):
    # TODO(synk): dropout branches not implemented (module default dropout_enable=False).
    B, T = utterance.shape
    E = params["emb"].shape[1]
    H = params["w_hh"].shape[1]
    G = 4 * H
    S = params["w_slot"].shape[0]
    I = params["w_int"].shape[0]
    BP = _round_up(B, 8)            # 8-sublane aligned batch
    SP = _round_up(S, 128)          # lane-dense (unmasked) output stores
    IP = _round_up(I, 128)

    # Time-major token ids, batch padded with pad_index=0 rows (embed to zero),
    # one flat gather -> (T*BP, E): no (B,T,E)->(T,B,E) activation transpose.
    utt_tm = jnp.zeros((T, BP), jnp.int32).at[:, :B].set(
        utterance.astype(jnp.int32).T)
    x2d = jnp.take(params["emb"].astype(jnp.float32),
                   utt_tm.reshape(T * BP), axis=0)               # (T*BP, E)

    lengths = jnp.zeros((BP,), jnp.int32).at[:B].set(seq_lengths.astype(jnp.int32))
    lens_full = jnp.broadcast_to(lengths[:, None], (BP, G)).astype(jnp.int32)
    maxlen = jnp.minimum(jnp.max(lengths), T).astype(jnp.int32).reshape(1)

    bias = (params["b_ih"] + params["b_hh"]).reshape(1, G).astype(jnp.float32)
    wih_t = params["w_ih"].T.astype(jnp.float32)                 # (E, 4H)
    # W_hh pre-transposed and zero-padded so the recurrence contracts the whole
    # packed (BP, 4H) state tile (only the h lanes hit non-zero rows).
    whh_pt = jnp.zeros((G, G), jnp.float32).at[:H, :].set(params["w_hh"].T)
    wslot_pt = jnp.zeros((G, SP), jnp.float32).at[:H, :S].set(params["w_slot"].T)
    bslot_p = jnp.zeros((1, SP), jnp.float32).at[0, :S].set(params["b_slot"])
    wint_pt = jnp.zeros((G, IP), jnp.float32).at[:H, :I].set(params["w_int"].T)
    bint_p = jnp.zeros((1, IP), jnp.float32).at[0, :I].set(params["b_int"])

    vmem = pl.BlockSpec(memory_space=pltpu.MemorySpace.VMEM)
    smem = pl.BlockSpec(memory_space=pltpu.MemorySpace.SMEM)

    slots2d, intent_p = pl.pallas_call(
        lstm_ias_kernel,
        out_shape=(jax.ShapeDtypeStruct((T * BP, SP), jnp.float32),
                   jax.ShapeDtypeStruct((BP, IP), jnp.float32)),
        in_specs=[smem] + [vmem] * 9,
        out_specs=(vmem, vmem),
        scratch_shapes=[
            pltpu.VMEM((T * BP, G), jnp.float32),   # x @ W_ih^T + bias, all steps
            pltpu.VMEM((T * BP, G), jnp.float32),   # masked encoder outputs
            pltpu.VMEM((BP, G), jnp.float32),       # packed [h | c | ...] state
        ],
    )(maxlen, x2d, lens_full, wih_t, bias, whh_pt,
      wslot_pt, bslot_p, wint_pt, bint_p)

    slots = (slots2d.reshape(T, BP, SP)[:, :B, :S]
             .transpose(1, 2, 0))                                # (B, out_slot, T)
    intent = intent_p[:B, :I]                                    # (B, out_int)
    return slots, intent


def reference_forward(params, utterance, seq_lengths):
    """Pure-JAX reference replicating the PyTorch forward (eval mode)."""
    emb = jnp.take(params["emb"], utterance, axis=0)
    B, T, E = emb.shape
    H = params["w_hh"].shape[1]
    bias = params["b_ih"] + params["b_hh"]

    def step(carry, xt_t):
        h, c = carry
        xt, t = xt_t
        gates = xt @ params["w_ih"].T + h @ params["w_hh"].T + bias
        i = jax.nn.sigmoid(gates[:, :H]); f = jax.nn.sigmoid(gates[:, H:2 * H])
        g = jnp.tanh(gates[:, 2 * H:3 * H]); o = jax.nn.sigmoid(gates[:, 3 * H:])
        c_new = f * c + i * g
        h_new = o * jnp.tanh(c_new)
        mask = (t < seq_lengths)[:, None].astype(jnp.float32)
        return (mask * h_new + (1 - mask) * h,
                mask * c_new + (1 - mask) * c), mask * h_new

    xs = jnp.transpose(emb, (1, 0, 2))
    (hT, _), enc = lax.scan(step,
                            (jnp.zeros((B, H), jnp.float32),
                             jnp.zeros((B, H), jnp.float32)),
                            (xs, jnp.arange(T)))
    enc = jnp.transpose(enc, (1, 0, 2))
    slots = enc @ params["w_slot"].T + params["b_slot"]
    intent = hT @ params["w_int"].T + params["b_int"]
    return jnp.transpose(slots, (0, 2, 1)), intent


def init_params(key, vocab_len, emb_size, hid_size, out_slot, out_int, pad_index=0):
    ks = jax.random.split(key, 9)
    k = 1.0 / jnp.sqrt(hid_size)
    emb = jax.random.normal(ks[0], (vocab_len, emb_size), jnp.float32)
    emb = emb.at[pad_index].set(0.0)                             # padding_idx=0
    u = lambda kk, shape, lim: jax.random.uniform(kk, shape, jnp.float32, -lim, lim)
    return {
        "emb": emb,
        "w_ih": u(ks[1], (4 * hid_size, emb_size), k),
        "w_hh": u(ks[2], (4 * hid_size, hid_size), k),
        "b_ih": u(ks[3], (4 * hid_size,), k),
        "b_hh": u(ks[4], (4 * hid_size,), k),
        "w_slot": u(ks[5], (out_slot, hid_size), 1.0 / jnp.sqrt(hid_size)),
        "b_slot": u(ks[6], (out_slot,), 1.0 / jnp.sqrt(hid_size)),
        "w_int": u(ks[7], (out_int, hid_size), 1.0 / jnp.sqrt(hid_size)),
        "b_int": u(ks[8], (out_int,), 1.0 / jnp.sqrt(hid_size)),
    }


if __name__ == "__main__":
    emb_size, hid_size = 32, 32
    out_slot, out_int = 16, 8
    vocab_len = 50
    B, T = 2, 8

    key = jax.random.PRNGKey(0)
    kp, ku = jax.random.split(key)
    params = init_params(kp, vocab_len, emb_size, hid_size, out_slot, out_int)

    seq_lengths = jnp.array([T, 5], dtype=jnp.int32)             # sorted descending
    utterance = jax.random.randint(ku, (B, T), 1, vocab_len, dtype=jnp.int32)
    pad_mask = jnp.arange(T)[None, :] < seq_lengths[:, None]
    utterance = jnp.where(pad_mask, utterance, 0)                # pad_index = 0

    slots, intent = jax.jit(model_ias_forward)(params, utterance, seq_lengths)
    jax.block_until_ready((slots, intent))

    slots_ref, intent_ref = reference_forward(params, utterance, seq_lengths)
    assert slots.shape == (B, out_slot, T) and intent.shape == (B, out_int)
    assert jnp.allclose(slots, slots_ref, rtol=1e-4, atol=1e-4)
    assert jnp.allclose(intent, intent_ref, rtol=1e-4, atol=1e-4)

    print("KERNEL_OK")
</pallas_src>

<mosaic_0001>
module attributes {stable_mosaic.version = 11 : i64} {
  func.func @lstm_ias_kernel(%arg0: memref<1xi32, #tpu.memory_space<smem>>, %arg1: memref<64x32xf32, #tpu.memory_space<vmem>>, %arg2: memref<8x128xi32, #tpu.memory_space<vmem>>, %arg3: memref<32x128xf32, #tpu.memory_space<vmem>>, %arg4: memref<1x128xf32, #tpu.memory_space<vmem>>, %arg5: memref<128x128xf32, #tpu.memory_space<vmem>>, %arg6: memref<128x128xf32, #tpu.memory_space<vmem>>, %arg7: memref<1x128xf32, #tpu.memory_space<vmem>>, %arg8: memref<128x128xf32, #tpu.memory_space<vmem>>, %arg9: memref<1x128xf32, #tpu.memory_space<vmem>>, %arg10: memref<64x128xf32, #tpu.memory_space<vmem>>, %arg11: memref<8x128xf32, #tpu.memory_space<vmem>>, %arg12: memref<64x128xf32, #tpu.memory_space<vmem>>, %arg13: memref<64x128xf32, #tpu.memory_space<vmem>>, %arg14: memref<8x128xf32, #tpu.memory_space<vmem>>) attributes {dimension_semantics = [], scalar_prefetch = 0 : i64, scratch_operands = 3 : i64, tpu.core_type = #tpu.core_type<tc>} {
    %c0 = arith.constant 0 : index
    %c0_0 = arith.constant 0 : index
    %0 = vector.load %arg1[%c0, %c0_0] : memref<64x32xf32, #tpu.memory_space<vmem>>, vector<64x32xf32>
    %c0_1 = arith.constant 0 : index
    %c0_2 = arith.constant 0 : index
    %1 = vector.load %arg3[%c0_1, %c0_2] : memref<32x128xf32, #tpu.memory_space<vmem>>, vector<32x128xf32>
    %cst = arith.constant dense<0.000000e+00> : vector<64x128xf32>
    %2 = tpu.matmul %0, %1, %cst {dimension_numbers = #tpu.dot_dimension_numbers<[1], [0], [0], [1], [0, 0, 1, 1], [], []>} : vector<64x32xf32>, vector<32x128xf32>, vector<64x128xf32> -> vector<64x128xf32>
    %c0_3 = arith.constant 0 : index
    %c0_4 = arith.constant 0 : index
    %3 = vector.load %arg4[%c0_3, %c0_4] : memref<1x128xf32, #tpu.memory_space<vmem>>, vector<1x128xf32>
    %4 = vector.broadcast %3 : vector<1x128xf32> to vector<64x128xf32>
    %5 = arith.addf %2, %4 : vector<64x128xf32>
    %c0_5 = arith.constant 0 : index
    %c0_6 = arith.constant 0 : index
    %6 = vector.load %arg12[%c0_5, %c0_6] : memref<64x128xf32, #tpu.memory_space<vmem>>, vector<64x128xf32>
    tpu.vector_store %arg12[%c0_5, %c0_6], %5 {strides = array<i32>} : memref<64x128xf32, #tpu.memory_space<vmem>>, vector<64x128xf32>,
    %cst_7 = arith.constant 0.000000e+00 : f32
    %7 = vector.broadcast %cst_7 : f32 to vector<64x128xf32>
    %c0_8 = arith.constant 0 : index
    %c0_9 = arith.constant 0 : index
    %8 = vector.load %arg13[%c0_8, %c0_9] : memref<64x128xf32, #tpu.memory_space<vmem>>, vector<64x128xf32>
    tpu.vector_store %arg13[%c0_8, %c0_9], %7 {strides = array<i32>} : memref<64x128xf32, #tpu.memory_space<vmem>>, vector<64x128xf32>,
    %cst_10 = arith.constant 0.000000e+00 : f32
    %9 = vector.broadcast %cst_10 : f32 to vector<8x128xf32>
    %c0_11 = arith.constant 0 : index
    %c0_12 = arith.constant 0 : index
    %10 = vector.load %arg14[%c0_11, %c0_12] : memref<8x128xf32, #tpu.memory_space<vmem>>, vector<8x128xf32>
    tpu.vector_store %arg14[%c0_11, %c0_12], %9 {strides = array<i32>} : memref<8x128xf32, #tpu.memory_space<vmem>>, vector<8x128xf32>,
    %c0_13 = arith.constant 0 : index
    %11 = memref.load %arg0[%c0_13] : memref<1xi32, #tpu.memory_space<smem>>
    %c0_14 = arith.constant 0 : index
    %c0_15 = arith.constant 0 : index
    %12 = vector.load %arg5[%c0_14, %c0_15] : memref<128x128xf32, #tpu.memory_space<vmem>>, vector<128x128xf32>
    %c0_16 = arith.constant 0 : index
    %c0_17 = arith.constant 0 : index
    %13 = vector.load %arg2[%c0_16, %c0_17] : memref<8x128xi32, #tpu.memory_space<vmem>>, vector<8x128xi32>
    %14 = tpu.iota {dimensions = array<i32: 1>} : vector<8x128xi32>
    %c32_i32 = arith.constant 32 : i32
    %15 = vector.broadcast %c32_i32 : i32 to vector<8x128xi32>
    %16 = arith.cmpi slt, %14, %15 : vector<8x128xi32>
    %c0_i32 = arith.constant 0 : i32
    %17 = arith.cmpi slt, %c0_i32, %11 : i32
    %18 = arith.extui %17 : i1 to i32
    %c0_i32_18 = arith.constant 0 : i32
    %19 = arith.cmpi ne, %18, %c0_i32_18 : i32
    scf.if %19 {
      %c8_i32_44 = arith.constant 8 : i32
      %55 = arith.muli %c0_i32, %c8_i32_44 : i32
      %56 = tpu.assume_multiple %55, 8 : i32
      %57 = arith.index_cast %56 : i32 to index
      %c0_45 = arith.constant 0 : index
      %58 = vector.load %arg12[%57, %c0_45] : memref<64x128xf32, #tpu.memory_space<vmem>>, vector<8x128xf32>
      %c0_46 = arith.constant 0 : index
      %c0_47 = arith.constant 0 : index
      %59 = vector.load %arg14[%c0_46, %c0_47] : memref<8x128xf32, #tpu.memory_space<vmem>>, vector<8x128xf32>
      %cst_48 = arith.constant dense<0.000000e+00> : vector<8x128xf32>
      %60 = tpu.matmul %59, %12, %cst_48 {dimension_numbers = #tpu.dot_dimension_numbers<[1], [0], [0], [1], [0, 0, 1, 1], [], []>} : vector<8x128xf32>, vector<128x128xf32>, vector<8x128xf32> -> vector<8x128xf32>
      %61 = arith.addf %58, %60 : vector<8x128xf32>
      %62 = arith.negf %61 : vector<8x128xf32>
      %63 = math.exp %62 : vector<8x128xf32>
      %cst_49 = arith.constant 1.000000e+00 : f32
      %64 = vector.broadcast %cst_49 : f32 to vector<8x128xf32>
      %65 = arith.addf %64, %63 : vector<8x128xf32>
      %66 = arith.divf %64, %65 : vector<8x128xf32>
      %67 = math.tanh %61 : vector<8x128xf32>
      %c32_i32_50 = arith.constant 32 : i32
      %68 = tpu.dynamic_rotate %66 by %c32_i32_50 dim 1 : vector<8x128xf32>, i32 -> vector<8x128xf32>
      %c96_i32 = arith.constant 96 : i32
      %69 = tpu.dynamic_rotate %67 by %c96_i32 dim 1 : vector<8x128xf32>, i32 -> vector<8x128xf32>
      %70 = arith.mulf %68, %69 : vector<8x128xf32>
      %71 = arith.mulf %66, %59 : vector<8x128xf32>
      %72 = arith.addf %70, %71 : vector<8x128xf32>
      %73 = math.tanh %72 : vector<8x128xf32>
      %c96_i32_51 = arith.constant 96 : i32
      %74 = tpu.dynamic_rotate %73 by %c96_i32_51 dim 1 : vector<8x128xf32>, i32 -> vector<8x128xf32>
      %75 = arith.mulf %68, %74 : vector<8x128xf32>
      %76 = arith.select %16, %75, %72 : vector<8x128xi1>, vector<8x128xf32>
      %77 = vector.broadcast %c0_i32 : i32 to vector<8x128xi32>
      %78 = arith.cmpi slt, %77, %13 : vector<8x128xi32>
      %79 = arith.select %78, %76, %59 : vector<8x128xi1>, vector<8x128xf32>
      %c0_52 = arith.constant 0 : index
      %c0_53 = arith.constant 0 : index
      %80 = vector.load %arg14[%c0_52, %c0_53] : memref<8x128xf32, #tpu.memory_space<vmem>>, vector<8x128xf32>
      tpu.vector_store %arg14[%c0_52, %c0_53], %79 {strides = array<i32>} : memref<8x128xf32, #tpu.memory_space<vmem>>, vector<8x128xf32>,
      %cst_54 = arith.constant 0.000000e+00 : f32
      %81 = vector.broadcast %cst_54 : f32 to vector<8x128xf32>
      %82 = arith.select %78, %75, %81 : vector<8x128xi1>, vector<8x128xf32>
      %83 = arith.index_cast %56 : i32 to index
      %c0_55 = arith.constant 0 : index
      %84 = vector.load %arg13[%83, %c0_55] : memref<64x128xf32, #tpu.memory_space<vmem>>, vector<8x128xf32>
      tpu.vector_store %arg13[%83, %c0_55], %82 {strides = array<i32>} : memref<64x128xf32, #tpu.memory_space<vmem>>, vector<8x128xf32>,
    } else {
    }
    %c1_i32 = arith.constant 1 : i32
    %20 = arith.cmpi slt, %c1_i32, %11 : i32
    %21 = arith.extui %20 : i1 to i32
    %c0_i32_19 = arith.constant 0 : i32
    %22 = arith.cmpi ne, %21, %c0_i32_19 : i32
    scf.if %22 {
      %c8_i32_44 = arith.constant 8 : i32
      %55 = arith.muli %c1_i32, %c8_i32_44 : i32
      %56 = tpu.assume_multiple %55, 8 : i32
      %57 = arith.index_cast %56 : i32 to index
      %c0_45 = arith.constant 0 : index
      %58 = vector.load %arg12[%57, %c0_45] : memref<64x128xf32, #tpu.memory_space<vmem>>, vector<8x128xf32>
      %c0_46 = arith.constant 0 : index
      %c0_47 = arith.constant 0 : index
      %59 = vector.load %arg14[%c0_46, %c0_47] : memref<8x128xf32, #tpu.memory_space<vmem>>, vector<8x128xf32>
      %cst_48 = arith.constant dense<0.000000e+00> : vector<8x128xf32>
      %60 = tpu.matmul %59, %12, %cst_48 {dimension_numbers = #tpu.dot_dimension_numbers<[1], [0], [0], [1], [0, 0, 1, 1], [], []>} : vector<8x128xf32>, vector<128x128xf32>, vector<8x128xf32> -> vector<8x128xf32>
      %61 = arith.addf %58, %60 : vector<8x128xf32>
      %62 = arith.negf %61 : vector<8x128xf32>
      %63 = math.exp %62 : vector<8x128xf32>
      %cst_49 = arith.constant 1.000000e+00 : f32
      %64 = vector.broadcast %cst_49 : f32 to vector<8x128xf32>
      %65 = arith.addf %64, %63 : vector<8x128xf32>
      %66 = arith.divf %64, %65 : vector<8x128xf32>
      %67 = math.tanh %61 : vector<8x128xf32>
      %c32_i32_50 = arith.constant 32 : i32
      %68 = tpu.dynamic_rotate %66 by %c32_i32_50 dim 1 : vector<8x128xf32>, i32 -> vector<8x128xf32>
      %c96_i32 = arith.constant 96 : i32
      %69 = tpu.dynamic_rotate %67 by %c96_i32 dim 1 : vector<8x128xf32>, i32 -> vector<8x128xf32>
      %70 = arith.mulf %68, %69 : vector<8x128xf32>
      %71 = arith.mulf %66, %59 : vector<8x128xf32>
      %72 = arith.addf %70, %71 : vector<8x128xf32>
      %73 = math.tanh %72 : vector<8x128xf32>
      %c96_i32_51 = arith.constant 96 : i32
      %74 = tpu.dynamic_rotate %73 by %c96_i32_51 dim 1 : vector<8x128xf32>, i32 -> vector<8x128xf32>
      %75 = arith.mulf %68, %74 : vector<8x128xf32>
      %76 = arith.select %16, %75, %72 : vector<8x128xi1>, vector<8x128xf32>
      %77 = vector.broadcast %c1_i32 : i32 to vector<8x128xi32>
      %78 = arith.cmpi slt, %77, %13 : vector<8x128xi32>
      %79 = arith.select %78, %76, %59 : vector<8x128xi1>, vector<8x128xf32>
      %c0_52 = arith.constant 0 : index
      %c0_53 = arith.constant 0 : index
      %80 = vector.load %arg14[%c0_52, %c0_53] : memref<8x128xf32, #tpu.memory_space<vmem>>, vector<8x128xf32>
      tpu.vector_store %arg14[%c0_52, %c0_53], %79 {strides = array<i32>} : memref<8x128xf32, #tpu.memory_space<vmem>>, vector<8x128xf32>,
      %cst_54 = arith.constant 0.000000e+00 : f32
      %81 = vector.broadcast %cst_54 : f32 to vector<8x128xf32>
      %82 = arith.select %78, %75, %81 : vector<8x128xi1>, vector<8x128xf32>
      %83 = arith.index_cast %56 : i32 to index
      %c0_55 = arith.constant 0 : index
      %84 = vector.load %arg13[%83, %c0_55] : memref<64x128xf32, #tpu.memory_space<vmem>>, vector<8x128xf32>
      tpu.vector_store %arg13[%83, %c0_55], %82 {strides = array<i32>} : memref<64x128xf32, #tpu.memory_space<vmem>>, vector<8x128xf32>,
    } else {
    }
    %c2_i32 = arith.constant 2 : i32
    %23 = arith.cmpi slt, %c2_i32, %11 : i32
    %24 = arith.extui %23 : i1 to i32
    %c0_i32_20 = arith.constant 0 : i32
    %25 = arith.cmpi ne, %24, %c0_i32_20 : i32
    scf.if %25 {
      %c8_i32_44 = arith.constant 8 : i32
      %55 = arith.muli %c2_i32, %c8_i32_44 : i32
      %56 = tpu.assume_multiple %55, 8 : i32
      %57 = arith.index_cast %56 : i32 to index
      %c0_45 = arith.constant 0 : index
      %58 = vector.load %arg12[%57, %c0_45] : memref<64x128xf32, #tpu.memory_space<vmem>>, vector<8x128xf32>
      %c0_46 = arith.constant 0 : index
      %c0_47 = arith.constant 0 : index
      %59 = vector.load %arg14[%c0_46, %c0_47] : memref<8x128xf32, #tpu.memory_space<vmem>>, vector<8x128xf32>
      %cst_48 = arith.constant dense<0.000000e+00> : vector<8x128xf32>
      %60 = tpu.matmul %59, %12, %cst_48 {dimension_numbers = #tpu.dot_dimension_numbers<[1], [0], [0], [1], [0, 0, 1, 1], [], []>} : vector<8x128xf32>, vector<128x128xf32>, vector<8x128xf32> -> vector<8x128xf32>
      %61 = arith.addf %58, %60 : vector<8x128xf32>
      %62 = arith.negf %61 : vector<8x128xf32>
      %63 = math.exp %62 : vector<8x128xf32>
      %cst_49 = arith.constant 1.000000e+00 : f32
      %64 = vector.broadcast %cst_49 : f32 to vector<8x128xf32>
      %65 = arith.addf %64, %63 : vector<8x128xf32>
      %66 = arith.divf %64, %65 : vector<8x128xf32>
      %67 = math.tanh %61 : vector<8x128xf32>
      %c32_i32_50 = arith.constant 32 : i32
      %68 = tpu.dynamic_rotate %66 by %c32_i32_50 dim 1 : vector<8x128xf32>, i32 -> vector<8x128xf32>
      %c96_i32 = arith.constant 96 : i32
      %69 = tpu.dynamic_rotate %67 by %c96_i32 dim 1 : vector<8x128xf32>, i32 -> vector<8x128xf32>
      %70 = arith.mulf %68, %69 : vector<8x128xf32>
      %71 = arith.mulf %66, %59 : vector<8x128xf32>
      %72 = arith.addf %70, %71 : vector<8x128xf32>
      %73 = math.tanh %72 : vector<8x128xf32>
      %c96_i32_51 = arith.constant 96 : i32
      %74 = tpu.dynamic_rotate %73 by %c96_i32_51 dim 1 : vector<8x128xf32>, i32 -> vector<8x128xf32>
      %75 = arith.mulf %68, %74 : vector<8x128xf32>
      %76 = arith.select %16, %75, %72 : vector<8x128xi1>, vector<8x128xf32>
      %77 = vector.broadcast %c2_i32 : i32 to vector<8x128xi32>
      %78 = arith.cmpi slt, %77, %13 : vector<8x128xi32>
      %79 = arith.select %78, %76, %59 : vector<8x128xi1>, vector<8x128xf32>
      %c0_52 = arith.constant 0 : index
      %c0_53 = arith.constant 0 : index
      %80 = vector.load %arg14[%c0_52, %c0_53] : memref<8x128xf32, #tpu.memory_space<vmem>>, vector<8x128xf32>
      tpu.vector_store %arg14[%c0_52, %c0_53], %79 {strides = array<i32>} : memref<8x128xf32, #tpu.memory_space<vmem>>, vector<8x128xf32>,
      %cst_54 = arith.constant 0.000000e+00 : f32
      %81 = vector.broadcast %cst_54 : f32 to vector<8x128xf32>
      %82 = arith.select %78, %75, %81 : vector<8x128xi1>, vector<8x128xf32>
      %83 = arith.index_cast %56 : i32 to index
      %c0_55 = arith.constant 0 : index
      %84 = vector.load %arg13[%83, %c0_55] : memref<64x128xf32, #tpu.memory_space<vmem>>, vector<8x128xf32>
      tpu.vector_store %arg13[%83, %c0_55], %82 {strides = array<i32>} : memref<64x128xf32, #tpu.memory_space<vmem>>, vector<8x128xf32>,
    } else {
    }
    %c3_i32 = arith.constant 3 : i32
    %26 = arith.cmpi slt, %c3_i32, %11 : i32
    %27 = arith.extui %26 : i1 to i32
    %c0_i32_21 = arith.constant 0 : i32
    %28 = arith.cmpi ne, %27, %c0_i32_21 : i32
    scf.if %28 {
      %c8_i32_44 = arith.constant 8 : i32
      %55 = arith.muli %c3_i32, %c8_i32_44 : i32
      %56 = tpu.assume_multiple %55, 8 : i32
      %57 = arith.index_cast %56 : i32 to index
      %c0_45 = arith.constant 0 : index
      %58 = vector.load %arg12[%57, %c0_45] : memref<64x128xf32, #tpu.memory_space<vmem>>, vector<8x128xf32>
      %c0_46 = arith.constant 0 : index
      %c0_47 = arith.constant 0 : index
      %59 = vector.load %arg14[%c0_46, %c0_47] : memref<8x128xf32, #tpu.memory_space<vmem>>, vector<8x128xf32>
      %cst_48 = arith.constant dense<0.000000e+00> : vector<8x128xf32>
      %60 = tpu.matmul %59, %12, %cst_48 {dimension_numbers = #tpu.dot_dimension_numbers<[1], [0], [0], [1], [0, 0, 1, 1], [], []>} : vector<8x128xf32>, vector<128x128xf32>, vector<8x128xf32> -> vector<8x128xf32>
      %61 = arith.addf %58, %60 : vector<8x128xf32>
      %62 = arith.negf %61 : vector<8x128xf32>
      %63 = math.exp %62 : vector<8x128xf32>
      %cst_49 = arith.constant 1.000000e+00 : f32
      %64 = vector.broadcast %cst_49 : f32 to vector<8x128xf32>
      %65 = arith.addf %64, %63 : vector<8x128xf32>
      %66 = arith.divf %64, %65 : vector<8x128xf32>
      %67 = math.tanh %61 : vector<8x128xf32>
      %c32_i32_50 = arith.constant 32 : i32
      %68 = tpu.dynamic_rotate %66 by %c32_i32_50 dim 1 : vector<8x128xf32>, i32 -> vector<8x128xf32>
      %c96_i32 = arith.constant 96 : i32
      %69 = tpu.dynamic_rotate %67 by %c96_i32 dim 1 : vector<8x128xf32>, i32 -> vector<8x128xf32>
      %70 = arith.mulf %68, %69 : vector<8x128xf32>
      %71 = arith.mulf %66, %59 : vector<8x128xf32>
      %72 = arith.addf %70, %71 : vector<8x128xf32>
      %73 = math.tanh %72 : vector<8x128xf32>
      %c96_i32_51 = arith.constant 96 : i32
      %74 = tpu.dynamic_rotate %73 by %c96_i32_51 dim 1 : vector<8x128xf32>, i32 -> vector<8x128xf32>
      %75 = arith.mulf %68, %74 : vector<8x128xf32>
      %76 = arith.select %16, %75, %72 : vector<8x128xi1>, vector<8x128xf32>
      %77 = vector.broadcast %c3_i32 : i32 to vector<8x128xi32>
      %78 = arith.cmpi slt, %77, %13 : vector<8x128xi32>
      %79 = arith.select %78, %76, %59 : vector<8x128xi1>, vector<8x128xf32>
      %c0_52 = arith.constant 0 : index
      %c0_53 = arith.constant 0 : index
      %80 = vector.load %arg14[%c0_52, %c0_53] : memref<8x128xf32, #tpu.memory_space<vmem>>, vector<8x128xf32>
      tpu.vector_store %arg14[%c0_52, %c0_53], %79 {strides = array<i32>} : memref<8x128xf32, #tpu.memory_space<vmem>>, vector<8x128xf32>,
      %cst_54 = arith.constant 0.000000e+00 : f32
      %81 = vector.broadcast %cst_54 : f32 to vector<8x128xf32>
      %82 = arith.select %78, %75, %81 : vector<8x128xi1>, vector<8x128xf32>
      %83 = arith.index_cast %56 : i32 to index
      %c0_55 = arith.constant 0 : index
      %84 = vector.load %arg13[%83, %c0_55] : memref<64x128xf32, #tpu.memory_space<vmem>>, vector<8x128xf32>
      tpu.vector_store %arg13[%83, %c0_55], %82 {strides = array<i32>} : memref<64x128xf32, #tpu.memory_space<vmem>>, vector<8x128xf32>,
    } else {
    }
    %c4_i32 = arith.constant 4 : i32
    %29 = arith.cmpi slt, %c4_i32, %11 : i32
    %30 = arith.extui %29 : i1 to i32
    %c0_i32_22 = arith.constant 0 : i32
    %31 = arith.cmpi ne, %30, %c0_i32_22 : i32
    scf.if %31 {
      %c8_i32_44 = arith.constant 8 : i32
      %55 = arith.muli %c4_i32, %c8_i32_44 : i32
      %56 = tpu.assume_multiple %55, 8 : i32
      %57 = arith.index_cast %56 : i32 to index
      %c0_45 = arith.constant 0 : index
      %58 = vector.load %arg12[%57, %c0_45] : memref<64x128xf32, #tpu.memory_space<vmem>>, vector<8x128xf32>
      %c0_46 = arith.constant 0 : index
      %c0_47 = arith.constant 0 : index
      %59 = vector.load %arg14[%c0_46, %c0_47] : memref<8x128xf32, #tpu.memory_space<vmem>>, vector<8x128xf32>
      %cst_48 = arith.constant dense<0.000000e+00> : vector<8x128xf32>
      %60 = tpu.matmul %59, %12, %cst_48 {dimension_numbers = #tpu.dot_dimension_numbers<[1], [0], [0], [1], [0, 0, 1, 1], [], []>} : vector<8x128xf32>, vector<128x128xf32>, vector<8x128xf32> -> vector<8x128xf32>
      %61 = arith.addf %58, %60 : vector<8x128xf32>
      %62 = arith.negf %61 : vector<8x128xf32>
      %63 = math.exp %62 : vector<8x128xf32>
      %cst_49 = arith.constant 1.000000e+00 : f32
      %64 = vector.broadcast %cst_49 : f32 to vector<8x128xf32>
      %65 = arith.addf %64, %63 : vector<8x128xf32>
      %66 = arith.divf %64, %65 : vector<8x128xf32>
      %67 = math.tanh %61 : vector<8x128xf32>
      %c32_i32_50 = arith.constant 32 : i32
      %68 = tpu.dynamic_rotate %66 by %c32_i32_50 dim 1 : vector<8x128xf32>, i32 -> vector<8x128xf32>
      %c96_i32 = arith.constant 96 : i32
      %69 = tpu.dynamic_rotate %67 by %c96_i32 dim 1 : vector<8x128xf32>, i32 -> vector<8x128xf32>
      %70 = arith.mulf %68, %69 : vector<8x128xf32>
      %71 = arith.mulf %66, %59 : vector<8x128xf32>
      %72 = arith.addf %70, %71 : vector<8x128xf32>
      %73 = math.tanh %72 : vector<8x128xf32>
      %c96_i32_51 = arith.constant 96 : i32
      %74 = tpu.dynamic_rotate %73 by %c96_i32_51 dim 1 : vector<8x128xf32>, i32 -> vector<8x128xf32>
      %75 = arith.mulf %68, %74 : vector<8x128xf32>
      %76 = arith.select %16, %75, %72 : vector<8x128xi1>, vector<8x128xf32>
      %77 = vector.broadcast %c4_i32 : i32 to vector<8x128xi32>
      %78 = arith.cmpi slt, %77, %13 : vector<8x128xi32>
      %79 = arith.select %78, %76, %59 : vector<8x128xi1>, vector<8x128xf32>
      %c0_52 = arith.constant 0 : index
      %c0_53 = arith.constant 0 : index
      %80 = vector.load %arg14[%c0_52, %c0_53] : memref<8x128xf32, #tpu.memory_space<vmem>>, vector<8x128xf32>
      tpu.vector_store %arg14[%c0_52, %c0_53], %79 {strides = array<i32>} : memref<8x128xf32, #tpu.memory_space<vmem>>, vector<8x128xf32>,
      %cst_54 = arith.constant 0.000000e+00 : f32
      %81 = vector.broadcast %cst_54 : f32 to vector<8x128xf32>
      %82 = arith.select %78, %75, %81 : vector<8x128xi1>, vector<8x128xf32>
      %83 = arith.index_cast %56 : i32 to index
      %c0_55 = arith.constant 0 : index
      %84 = vector.load %arg13[%83, %c0_55] : memref<64x128xf32, #tpu.memory_space<vmem>>, vector<8x128xf32>
      tpu.vector_store %arg13[%83, %c0_55], %82 {strides = array<i32>} : memref<64x128xf32, #tpu.memory_space<vmem>>, vector<8x128xf32>,
    } else {
    }
    %c5_i32 = arith.constant 5 : i32
    %32 = arith.cmpi slt, %c5_i32, %11 : i32
    %33 = arith.extui %32 : i1 to i32
    %c0_i32_23 = arith.constant 0 : i32
    %34 = arith.cmpi ne, %33, %c0_i32_23 : i32
    scf.if %34 {
      %c8_i32_44 = arith.constant 8 : i32
      %55 = arith.muli %c5_i32, %c8_i32_44 : i32
      %56 = tpu.assume_multiple %55, 8 : i32
      %57 = arith.index_cast %56 : i32 to index
      %c0_45 = arith.constant 0 : index
      %58 = vector.load %arg12[%57, %c0_45] : memref<64x128xf32, #tpu.memory_space<vmem>>, vector<8x128xf32>
      %c0_46 = arith.constant 0 : index
      %c0_47 = arith.constant 0 : index
      %59 = vector.load %arg14[%c0_46, %c0_47] : memref<8x128xf32, #tpu.memory_space<vmem>>, vector<8x128xf32>
      %cst_48 = arith.constant dense<0.000000e+00> : vector<8x128xf32>
      %60 = tpu.matmul %59, %12, %cst_48 {dimension_numbers = #tpu.dot_dimension_numbers<[1], [0], [0], [1], [0, 0, 1, 1], [], []>} : vector<8x128xf32>, vector<128x128xf32>, vector<8x128xf32> -> vector<8x128xf32>
      %61 = arith.addf %58, %60 : vector<8x128xf32>
      %62 = arith.negf %61 : vector<8x128xf32>
      %63 = math.exp %62 : vector<8x128xf32>
      %cst_49 = arith.constant 1.000000e+00 : f32
      %64 = vector.broadcast %cst_49 : f32 to vector<8x128xf32>
      %65 = arith.addf %64, %63 : vector<8x128xf32>
      %66 = arith.divf %64, %65 : vector<8x128xf32>
      %67 = math.tanh %61 : vector<8x128xf32>
      %c32_i32_50 = arith.constant 32 : i32
      %68 = tpu.dynamic_rotate %66 by %c32_i32_50 dim 1 : vector<8x128xf32>, i32 -> vector<8x128xf32>
      %c96_i32 = arith.constant 96 : i32
      %69 = tpu.dynamic_rotate %67 by %c96_i32 dim 1 : vector<8x128xf32>, i32 -> vector<8x128xf32>
      %70 = arith.mulf %68, %69 : vector<8x128xf32>
      %71 = arith.mulf %66, %59 : vector<8x128xf32>
      %72 = arith.addf %70, %71 : vector<8x128xf32>
      %73 = math.tanh %72 : vector<8x128xf32>
      %c96_i32_51 = arith.constant 96 : i32
      %74 = tpu.dynamic_rotate %73 by %c96_i32_51 dim 1 : vector<8x128xf32>, i32 -> vector<8x128xf32>
      %75 = arith.mulf %68, %74 : vector<8x128xf32>
      %76 = arith.select %16, %75, %72 : vector<8x128xi1>, vector<8x128xf32>
      %77 = vector.broadcast %c5_i32 : i32 to vector<8x128xi32>
      %78 = arith.cmpi slt, %77, %13 : vector<8x128xi32>
      %79 = arith.select %78, %76, %59 : vector<8x128xi1>, vector<8x128xf32>
      %c0_52 = arith.constant 0 : index
      %c0_53 = arith.constant 0 : index
      %80 = vector.load %arg14[%c0_52, %c0_53] : memref<8x128xf32, #tpu.memory_space<vmem>>, vector<8x128xf32>
      tpu.vector_store %arg14[%c0_52, %c0_53], %79 {strides = array<i32>} : memref<8x128xf32, #tpu.memory_space<vmem>>, vector<8x128xf32>,
      %cst_54 = arith.constant 0.000000e+00 : f32
      %81 = vector.broadcast %cst_54 : f32 to vector<8x128xf32>
      %82 = arith.select %78, %75, %81 : vector<8x128xi1>, vector<8x128xf32>
      %83 = arith.index_cast %56 : i32 to index
      %c0_55 = arith.constant 0 : index
      %84 = vector.load %arg13[%83, %c0_55] : memref<64x128xf32, #tpu.memory_space<vmem>>, vector<8x128xf32>
      tpu.vector_store %arg13[%83, %c0_55], %82 {strides = array<i32>} : memref<64x128xf32, #tpu.memory_space<vmem>>, vector<8x128xf32>,
    } else {
    }
    %c6_i32 = arith.constant 6 : i32
    %35 = arith.cmpi slt, %c6_i32, %11 : i32
    %36 = arith.extui %35 : i1 to i32
    %c0_i32_24 = arith.constant 0 : i32
    %37 = arith.cmpi ne, %36, %c0_i32_24 : i32
    scf.if %37 {
      %c8_i32_44 = arith.constant 8 : i32
      %55 = arith.muli %c6_i32, %c8_i32_44 : i32
      %56 = tpu.assume_multiple %55, 8 : i32
      %57 = arith.index_cast %56 : i32 to index
      %c0_45 = arith.constant 0 : index
      %58 = vector.load %arg12[%57, %c0_45] : memref<64x128xf32, #tpu.memory_space<vmem>>, vector<8x128xf32>
      %c0_46 = arith.constant 0 : index
      %c0_47 = arith.constant 0 : index
      %59 = vector.load %arg14[%c0_46, %c0_47] : memref<8x128xf32, #tpu.memory_space<vmem>>, vector<8x128xf32>
      %cst_48 = arith.constant dense<0.000000e+00> : vector<8x128xf32>
      %60 = tpu.matmul %59, %12, %cst_48 {dimension_numbers = #tpu.dot_dimension_numbers<[1], [0], [0], [1], [0, 0, 1, 1], [], []>} : vector<8x128xf32>, vector<128x128xf32>, vector<8x128xf32> -> vector<8x128xf32>
      %61 = arith.addf %58, %60 : vector<8x128xf32>
      %62 = arith.negf %61 : vector<8x128xf32>
      %63 = math.exp %62 : vector<8x128xf32>
      %cst_49 = arith.constant 1.000000e+00 : f32
      %64 = vector.broadcast %cst_49 : f32 to vector<8x128xf32>
      %65 = arith.addf %64, %63 : vector<8x128xf32>
      %66 = arith.divf %64, %65 : vector<8x128xf32>
      %67 = math.tanh %61 : vector<8x128xf32>
      %c32_i32_50 = arith.constant 32 : i32
      %68 = tpu.dynamic_rotate %66 by %c32_i32_50 dim 1 : vector<8x128xf32>, i32 -> vector<8x128xf32>
      %c96_i32 = arith.constant 96 : i32
      %69 = tpu.dynamic_rotate %67 by %c96_i32 dim 1 : vector<8x128xf32>, i32 -> vector<8x128xf32>
      %70 = arith.mulf %68, %69 : vector<8x128xf32>
      %71 = arith.mulf %66, %59 : vector<8x128xf32>
      %72 = arith.addf %70, %71 : vector<8x128xf32>
      %73 = math.tanh %72 : vector<8x128xf32>
      %c96_i32_51 = arith.constant 96 : i32
      %74 = tpu.dynamic_rotate %73 by %c96_i32_51 dim 1 : vector<8x128xf32>, i32 -> vector<8x128xf32>
      %75 = arith.mulf %68, %74 : vector<8x128xf32>
      %76 = arith.select %16, %75, %72 : vector<8x128xi1>, vector<8x128xf32>
      %77 = vector.broadcast %c6_i32 : i32 to vector<8x128xi32>
      %78 = arith.cmpi slt, %77, %13 : vector<8x128xi32>
      %79 = arith.select %78, %76, %59 : vector<8x128xi1>, vector<8x128xf32>
      %c0_52 = arith.constant 0 : index
      %c0_53 = arith.constant 0 : index
      %80 = vector.load %arg14[%c0_52, %c0_53] : memref<8x128xf32, #tpu.memory_space<vmem>>, vector<8x128xf32>
      tpu.vector_store %arg14[%c0_52, %c0_53], %79 {strides = array<i32>} : memref<8x128xf32, #tpu.memory_space<vmem>>, vector<8x128xf32>,
      %cst_54 = arith.constant 0.000000e+00 : f32
      %81 = vector.broadcast %cst_54 : f32 to vector<8x128xf32>
      %82 = arith.select %78, %75, %81 : vector<8x128xi1>, vector<8x128xf32>
      %83 = arith.index_cast %56 : i32 to index
      %c0_55 = arith.constant 0 : index
      %84 = vector.load %arg13[%83, %c0_55] : memref<64x128xf32, #tpu.memory_space<vmem>>, vector<8x128xf32>
      tpu.vector_store %arg13[%83, %c0_55], %82 {strides = array<i32>} : memref<64x128xf32, #tpu.memory_space<vmem>>, vector<8x128xf32>,
    } else {
    }
    %c7_i32 = arith.constant 7 : i32
    %38 = arith.cmpi slt, %c7_i32, %11 : i32
    %39 = arith.extui %38 : i1 to i32
    %c0_i32_25 = arith.constant 0 : i32
    %40 = arith.cmpi ne, %39, %c0_i32_25 : i32
    scf.if %40 {
      %c8_i32_44 = arith.constant 8 : i32
      %55 = arith.muli %c7_i32, %c8_i32_44 : i32
      %56 = tpu.assume_multiple %55, 8 : i32
      %57 = arith.index_cast %56 : i32 to index
      %c0_45 = arith.constant 0 : index
      %58 = vector.load %arg12[%57, %c0_45] : memref<64x128xf32, #tpu.memory_space<vmem>>, vector<8x128xf32>
      %c0_46 = arith.constant 0 : index
      %c0_47 = arith.constant 0 : index
      %59 = vector.load %arg14[%c0_46, %c0_47] : memref<8x128xf32, #tpu.memory_space<vmem>>, vector<8x128xf32>
      %cst_48 = arith.constant dense<0.000000e+00> : vector<8x128xf32>
      %60 = tpu.matmul %59, %12, %cst_48 {dimension_numbers = #tpu.dot_dimension_numbers<[1], [0], [0], [1], [0, 0, 1, 1], [], []>} : vector<8x128xf32>, vector<128x128xf32>, vector<8x128xf32> -> vector<8x128xf32>
      %61 = arith.addf %58, %60 : vector<8x128xf32>
      %62 = arith.negf %61 : vector<8x128xf32>
      %63 = math.exp %62 : vector<8x128xf32>
      %cst_49 = arith.constant 1.000000e+00 : f32
      %64 = vector.broadcast %cst_49 : f32 to vector<8x128xf32>
      %65 = arith.addf %64, %63 : vector<8x128xf32>
      %66 = arith.divf %64, %65 : vector<8x128xf32>
      %67 = math.tanh %61 : vector<8x128xf32>
      %c32_i32_50 = arith.constant 32 : i32
      %68 = tpu.dynamic_rotate %66 by %c32_i32_50 dim 1 : vector<8x128xf32>, i32 -> vector<8x128xf32>
      %c96_i32 = arith.constant 96 : i32
      %69 = tpu.dynamic_rotate %67 by %c96_i32 dim 1 : vector<8x128xf32>, i32 -> vector<8x128xf32>
      %70 = arith.mulf %68, %69 : vector<8x128xf32>
      %71 = arith.mulf %66, %59 : vector<8x128xf32>
      %72 = arith.addf %70, %71 : vector<8x128xf32>
      %73 = math.tanh %72 : vector<8x128xf32>
      %c96_i32_51 = arith.constant 96 : i32
      %74 = tpu.dynamic_rotate %73 by %c96_i32_51 dim 1 : vector<8x128xf32>, i32 -> vector<8x128xf32>
      %75 = arith.mulf %68, %74 : vector<8x128xf32>
      %76 = arith.select %16, %75, %72 : vector<8x128xi1>, vector<8x128xf32>
      %77 = vector.broadcast %c7_i32 : i32 to vector<8x128xi32>
      %78 = arith.cmpi slt, %77, %13 : vector<8x128xi32>
      %79 = arith.select %78, %76, %59 : vector<8x128xi1>, vector<8x128xf32>
      %c0_52 = arith.constant 0 : index
      %c0_53 = arith.constant 0 : index
      %80 = vector.load %arg14[%c0_52, %c0_53] : memref<8x128xf32, #tpu.memory_space<vmem>>, vector<8x128xf32>
      tpu.vector_store %arg14[%c0_52, %c0_53], %79 {strides = array<i32>} : memref<8x128xf32, #tpu.memory_space<vmem>>, vector<8x128xf32>,
      %cst_54 = arith.constant 0.000000e+00 : f32
      %81 = vector.broadcast %cst_54 : f32 to vector<8x128xf32>
      %82 = arith.select %78, %75, %81 : vector<8x128xi1>, vector<8x128xf32>
      %83 = arith.index_cast %56 : i32 to index
      %c0_55 = arith.constant 0 : index
      %84 = vector.load %arg13[%83, %c0_55] : memref<64x128xf32, #tpu.memory_space<vmem>>, vector<8x128xf32>
      tpu.vector_store %arg13[%83, %c0_55], %82 {strides = array<i32>} : memref<64x128xf32, #tpu.memory_space<vmem>>, vector<8x128xf32>,
    } else {
    }
    %c8_i32 = arith.constant 8 : i32
    %c0_26 = arith.constant 0 : index
    %c0_27 = arith.constant 0 : index
    %41 = vector.load %arg13[%c0_26, %c0_27] : memref<64x128xf32, #tpu.memory_space<vmem>>, vector<64x128xf32>
    %c0_28 = arith.constant 0 : index
    %c0_29 = arith.constant 0 : index
    %42 = vector.load %arg6[%c0_28, %c0_29] : memref<128x128xf32, #tpu.memory_space<vmem>>, vector<128x128xf32>
    %cst_30 = arith.constant dense<0.000000e+00> : vector<64x128xf32>
    %43 = tpu.matmul %41, %42, %cst_30 {dimension_numbers = #tpu.dot_dimension_numbers<[1], [0], [0], [1], [0, 0, 1, 1], [], []>} : vector<64x128xf32>, vector<128x128xf32>, vector<64x128xf32> -> vector<64x128xf32>
    %c0_31 = arith.constant 0 : index
    %c0_32 = arith.constant 0 : index
    %44 = vector.load %arg7[%c0_31, %c0_32] : memref<1x128xf32, #tpu.memory_space<vmem>>, vector<1x128xf32>
    %45 = vector.broadcast %44 : vector<1x128xf32> to vector<64x128xf32>
    %46 = arith.addf %43, %45 : vector<64x128xf32>
    %c0_33 = arith.constant 0 : index
    %c0_34 = arith.constant 0 : index
    %47 = vector.load %arg10[%c0_33, %c0_34] : memref<64x128xf32, #tpu.memory_space<vmem>>, vector<64x128xf32>
    tpu.vector_store %arg10[%c0_33, %c0_34], %46 {strides = array<i32>} : memref<64x128xf32, #tpu.memory_space<vmem>>, vector<64x128xf32>,
    %c0_35 = arith.constant 0 : index
    %c0_36 = arith.constant 0 : index
    %48 = vector.load %arg14[%c0_35, %c0_36] : memref<8x128xf32, #tpu.memory_space<vmem>>, vector<8x128xf32>
    %c0_37 = arith.constant 0 : index
    %c0_38 = arith.constant 0 : index
    %49 = vector.load %arg8[%c0_37, %c0_38] : memref<128x128xf32, #tpu.memory_space<vmem>>, vector<128x128xf32>
    %cst_39 = arith.constant dense<0.000000e+00> : vector<8x128xf32>
    %50 = tpu.matmul %48, %49, %cst_39 {dimension_numbers = #tpu.dot_dimension_numbers<[1], [0], [0], [1], [0, 0, 1, 1], [], []>} : vector<8x128xf32>, vector<128x128xf32>, vector<8x128xf32> -> vector<8x128xf32>
    %c0_40 = arith.constant 0 : index
    %c0_41 = arith.constant 0 : index
    %51 = vector.load %arg9[%c0_40, %c0_41] : memref<1x128xf32, #tpu.memory_space<vmem>>, vector<1x128xf32>
    %52 = vector.broadcast %51 : vector<1x128xf32> to vector<8x128xf32>
    %53 = arith.addf %50, %52 : vector<8x128xf32>
    %c0_42 = arith.constant 0 : index
    %c0_43 = arith.constant 0 : index
    %54 = vector.load %arg11[%c0_42, %c0_43] : memref<8x128xf32, #tpu.memory_space<vmem>>, vector<8x128xf32>
    tpu.vector_store %arg11[%c0_42, %c0_43], %53 {strides = array<i32>} : memref<8x128xf32, #tpu.memory_space<vmem>>, vector<8x128xf32>,
    return
  }
}

</mosaic_0001>

<bundles_post_ra>
// kernel: model_ias_forward.1
= control target key start
LH: loop header
LB: loop body
LE: loop exit
PB: predicated region body
PF: predicated region fallthrough
CT: control target
= control target key end

     0   :  { %vm54_vm0 = vcmask 261120   ;;  %v155_v12 = vlaneseq  ;;  %v963_v14 = vmov 0.0   ;;  %s1480_s3 = inlined_call_operand.vmem [shape: f32[32,128], index: 3, kind: input, shape index: {}]   ;;  %s1481_s0 = inlined_call_operand.<no memory space> [shape: s32[1], index: 0, kind: input, shape index: {}]   ;;  %s1482_s6 = inlined_call_operand.vmem [shape: f32[128,128], index: 6, kind: input, shape index: {}]   ;;  %s1483_s7 = inlined_call_operand.vmem [shape: f32[1,128], index: 7, kind: input, shape index: {}]   ;;  %s1484_s8 = inlined_call_operand.vmem [shape: f32[128,128], index: 8, kind: input, shape index: {}]   ;;  %s1485_s9 = inlined_call_operand.vmem [shape: f32[1,128], index: 9, kind: input, shape index: {}]   ;;  %s1486_s10 = inlined_call_operand.vmem [shape: f32[64,128], index: 10, kind: output, shape index: {0}]   ;;  %s1487_s11 = inlined_call_operand.vmem [shape: f32[8,128], index: 11, kind: output, shape index: {1}]   ;;  %s1488_s1 = inlined_call_operand.vmem [shape: f32[64,32], index: 1, kind: input, shape index: {}]   ;;  %s1489_s4 = inlined_call_operand.vmem [shape: f32[1,128], index: 4, kind: input, shape index: {}]   ;;  %s1490_s5 = inlined_call_operand.vmem [shape: f32[128,128], index: 5, kind: input, shape index: {}]   ;;  %s1491_s2 = inlined_call_operand.vmem [shape: s32[8,128], index: 2, kind: input, shape index: {}]  }
   0x1   :  { %v49_v0 = vld [vmem:[%s1480_s3 + $0x18] sm:$0xff]  ;;  %v48_v1 = vld [vmem:[%s1480_s3 + $0x10] sm:$0xff]  ;;  %v47_v2 = vld [vmem:[%s1480_s3 + $0x8] sm:$0xff]  ;;  %128 = vst [vmem:[#allocation3] sm:$0xff] %v963_v14  ;;  %p819_p0 = scmp.le.s32.totalorder %s1481_s0, 0 }
   0x2   :  { %836 = vmatpush.msra.mxu2 %v49_v0  ;;  %837 = vmatpush.msra.mxu3 %v49_v0  ;;  %v46_v3 = vld [vmem:[%s1480_s3] sm:$0xff]  ;;  %v44_v5 = vld [vmem:[%s1488_s1 + $0x30] sm:$0xff]  ;;  %v43_v8 = vld [vmem:[%s1488_s1 + $0x28] sm:$0xff]  ;;  %v1084_v13 = vand.u32 127, %v155_v12  ;;  %129 = vst [vmem:[#allocation3 + $0x18] sm:$0xff] %v963_v14  ;;  %s965_s15 = smov (!%p819_p0), 96  }
   0x3   :  { %91 = vmatpush.msra.mxu0 %v49_v0  ;;  %835 = vmatpush.msra.mxu1 %v49_v0  ;;  %v42_v4 = vld [vmem:[%s1488_s1 + $0x20] sm:$0xff]  ;;  %v40_v7 = vld [vmem:[%s1488_s1 + $0x10] sm:$0xff]  ;;  %v45_v9 = vld [vmem:[%s1488_s1 + $0x38] sm:$0xff]  ;;  %130 = vst [vmem:[#allocation3 + $0x10] sm:$0xff] %v963_v14 }
   0x4   :  { %839 = vmatpush.msra.mxu2 %v48_v1  ;;  %840 = vmatpush.msra.mxu3 %v48_v1  ;;  %v38_v6 = vld [vmem:[%s1488_s1] sm:$0xff]  ;;  %v39_v10 = vld [vmem:[%s1488_s1 + $0x8] sm:$0xff]  ;;  %v41_v11 = vld [vmem:[%s1488_s1 + $0x18] sm:$0xff]  ;;  %vm157_vm1 = vcmp.lt.s32.totalorder %v1084_v13, 32  ;;  %131 = vst [vmem:[#allocation3 + $0x20] sm:$0xff] %v963_v14 }
   0x5   :  { %92 = vmatpush.msra.mxu0 %v48_v1  ;;  %838 = vmatpush.msra.mxu1 %v48_v1  ;;  %v1089_v15 = vld [vmem:[%s1490_s5] sm:$0xff]  ;;  %v1094_v16 = vld [vmem:[%s1490_s5 + $0x8] sm:$0xff]  ;;  %v1099_v17 = vld [vmem:[%s1490_s5 + $0x10] sm:$0xff]  ;;  %132 = vst [vmem:[#allocation3 + $0x28] sm:$0xff] %v963_v14 }
   0x6   :  { %842 = vmatpush.msra.mxu2 %v47_v2  ;;  %843 = vmatpush.msra.mxu3 %v47_v2  ;;  %v1105_v18 = vld [vmem:[%s1490_s5 + $0x18] sm:$0xff]  ;;  %v1110_v19 = vld [vmem:[%s1490_s5 + $0x20] sm:$0xff]  ;;  %v1115_v20 = vld [vmem:[%s1490_s5 + $0x28] sm:$0xff]  ;;  %133 = vst [vmem:[#allocation3 + $0x8] sm:$0xff] %v963_v14 }
   0x7   :  { %93 = vmatpush.msra.mxu0 %v47_v2  ;;  %841 = vmatpush.msra.mxu1 %v47_v2  ;;  %v1120_v21 = vld [vmem:[%s1490_s5 + $0x30] sm:$0xff]  ;;  %v1125_v22 = vld [vmem:[%s1490_s5 + $0x38] sm:$0xff]  ;;  %v1130_v23 = vld [vmem:[%s1490_s5 + $0x40] sm:$0xff]  ;;  %134 = vst [vmem:[#allocation3 + $0x30] sm:$0xff] %v963_v14 }
   0x8   :  { %845 = vmatpush.msra.mxu2 %v46_v3  ;;  %846 = vmatpush.msra.mxu3 %v46_v3  ;;  %v1135_v24 = vld [vmem:[%s1490_s5 + $0x48] sm:$0xff]  ;;  %v1140_v25 = vld [vmem:[%s1490_s5 + $0x50] sm:$0xff]  ;;  %v1145_v26 = vld [vmem:[%s1490_s5 + $0x58] sm:$0xff]  ;;  %135 = vst [vmem:[#allocation3 + $0x38] sm:$0xff] %v963_v14 }
   0x9   :  { %815 = vmatmul.msk.f32.vlgmr.msra.gmra.mxu2 %vm54_vm0, %v42_v4  ;;  %817 = vmatmul.msk.f32.vlgmr.msra.gmra.mxu3 %vm54_vm0, %v44_v5  ;;  %v1150_v27 = vld [vmem:[%s1490_s5 + $0x60] sm:$0xff]  ;;  %v1155_v28 = vld [vmem:[%s1490_s5 + $0x68] sm:$0xff]  ;;  %v1160_v29 = vld [vmem:[%s1490_s5 + $0x70] sm:$0xff]  ;;  %136 = vst [vmem:[#allocation4] sm:$0xff] %v963_v14 }
   0xa   :  { %94 = vmatpush.msra.mxu0 %v46_v3  ;;  %844 = vmatpush.msra.mxu1 %v46_v3  ;;  %v1165_v30 = vld [vmem:[%s1490_s5 + $0x78] sm:$0xff]  ;;  %v1170_v31 = vld [vmem:[%s1491_s2] sm:$0xff]  ;;  %s964_s5 = smov (!%p819_p0), 32  }
   0xb   :  { %811 = vmatmul.msk.f32.vlgmr.msra.gmra.mxu0 %vm54_vm0, %v38_v6  ;;  %813 = vmatmul.msk.f32.vlgmr.msra.gmra.mxu1 %vm54_vm0, %v40_v7  ;;  %v896_v32 = vld [vmem:[%s1489_s4] ss:$0 sm:$0xff] }
  0x11   :  { %816 = vmatmul.msk.f32.gmra.mxu2 %vm54_vm0, %v43_v8  ;;  %818 = vmatmul.msk.f32.gmra.mxu3 %vm54_vm0, %v45_v9 }
  0x13   :  { %812 = vmatmul.msk.f32.gmra.mxu0 %vm54_vm0, %v39_v10  ;;  %814 = vmatmul.msk.f32.gmra.mxu1 %vm54_vm0, %v41_v11 }
  0x88   :  { %v96_v33 = vpop.f32.mrf.mxu0  ;;  %v102_v34 = vpop.f32.mrf.mxu1 }
  0x89   :  { %v97_v35 = vadd.f32 %v896_v32, %v96_v33  ;;  %v103_v36 = vadd.f32 %v896_v32, %v102_v34 }
  0x8b   :  { %120 = vst [vmem:[#allocation2 + $0x30] sm:$0xff] %v97_v35 }
  0x8c   :  { %122 = vst [vmem:[#allocation2 + $0x18] sm:$0xff] %v103_v36  ;;  %v108_v37 = vpop.f32.mrf.mxu2  ;;  %v114_v38 = vpop.f32.mrf.mxu3 }
  0x8d   :  { %v109_v39 = vadd.f32 %v896_v32, %v108_v37  ;;  %v115_v40 = vadd.f32 %v896_v32, %v114_v38 }
  0x8f   :  { %124 = vst [vmem:[#allocation2 + $0x8] sm:$0xff] %v109_v39 }
  0x90   :  { %126 = vst [vmem:[#allocation2 + $0x28] sm:$0xff] %v115_v40  ;;  %v99_v41 = vpop.f32.mrf.mxu0  ;;  %v105_v42 = vpop.f32.mrf.mxu1 }
  0x91   :  { %v100_v43 = vadd.f32 %v896_v32, %v99_v41  ;;  %v106_v44 = vadd.f32 %v896_v32, %v105_v42 }
  0x93   :  { %121 = vst [vmem:[#allocation2] sm:$0xff] %v100_v43 }
  0x94   :  { %123 = vst [vmem:[#allocation2 + $0x10] sm:$0xff] %v106_v44  ;;  %v111_v45 = vpop.f32.mrf.mxu2  ;;  %v117_v46 = vpop.f32.mrf.mxu3  ;;  %161 = sbr.rel (%p819_p0) target bundleno = 594 (0x252), region = 45 }
  0x95   :  { %v112_v47 = vadd.f32 %v896_v32, %v111_v45  ;;  %v118_v48 = vadd.f32 %v896_v32, %v117_v46 }
  0x97   :  { %125 = vst [vmem:[#allocation2 + $0x20] sm:$0xff] %v112_v47 }
  0x98   :  { %127 = vst [vmem:[#allocation2 + $0x38] sm:$0xff] %v118_v48 }
  0x99   :  { %164 = vmatpush.msra.mxu0 %v1165_v30  ;;  %v163_v49 = vld [vmem:[#allocation4] sm:$0xff]  ;;  %v162_v50 = vld [vmem:[#allocation2 + $0x30] sm:$0xff]  ;;  %vm217_vm6 = vcmp.gt.s32.totalorder %v1170_v31, 0 }
  0x9b   :  { %165 = vmatpush.msra.mxu0 %v1160_v29 }
  0x9d   :  { %166 = vmatpush.msra.mxu0 %v1155_v28 }
  0x9f   :  { %167 = vmatpush.msra.mxu0 %v1150_v27 }
  0xa1   :  { %168 = vmatpush.msra.mxu0 %v1145_v26 }
  0xa3   :  { %169 = vmatpush.msra.mxu0 %v1140_v25 }
  0xa5   :  { %170 = vmatpush.msra.mxu0 %v1135_v24 }
  0xa7   :  { %171 = vmatpush.msra.mxu0 %v1130_v23 }
  0xa9   :  { %172 = vmatpush.msra.mxu0 %v1125_v22 }
  0xab   :  { %173 = vmatpush.msra.mxu0 %v1120_v21 }
  0xad   :  { %174 = vmatpush.msra.mxu0 %v1115_v20 }
  0xaf   :  { %175 = vmatpush.msra.mxu0 %v1110_v19 }
  0xb1   :  { %176 = vmatpush.msra.mxu0 %v1105_v18 }
  0xb3   :  { %177 = vmatpush.msra.mxu0 %v1099_v17 }
  0xb5   :  { %178 = vmatpush.msra.mxu0 %v1094_v16 }
  0xb7   :  { %179 = vmatpush.msra.mxu0 %v1089_v15 }
  0xb8   :  { %180 = vmatmul.f32.vlgmr.msra.gmra.mxu0 %v163_v49 }
 0x135   :  { %v181_v51 = vpop.f32.mrf.mxu0 }
 0x136   :  { %v184_v52 = vadd.f32 %v181_v51, %v162_v50 }
 0x138   :  { %v820_v53 = vmul.f32 -1.442695, %v184_v52 }
 0x13a   :  { %897 = vpow2.f32 %v820_v53 }
 0x140   :  { %v898_v54 = vpop.eup %897 }
 0x141   :  { %v188_v55 = vadd.f32 1.0, %v898_v54 }
 0x143   :  { %899 = vrcp.f32 %v188_v55  ;;  %v200_v59 = vand.u32 2147483648, %v188_v55  ;;  %v198_v61 = vand.u32 2147483647, %v188_v55  ;;  %vm194_vm3 = vweird.f32 %v188_v55 }
 0x144   :  { %901 = vtanh.f32 %v184_v52 }
 0x145   :  { %v201_v63 = vor.u32 1.1754944e-38, %v200_v59  ;;  %vm199_vm5 = vcmp.eq.f32.partialorder %v198_v61, 8.507059e+37 }
 0x149   :  { %v900_v56 = vpop.eup %899 }
 0x14a   :  { %v190_v57 = vmul.f32 %v900_v56, %v188_v55  ;;  %vm195_vm2 = vweird.f32 %v900_v56  ;;  %v902_v2 = vpop.eup %901 }
 0x14b   :  { %vm196_vm4 = vmor %vm194_vm3, %vm195_vm2 }
 0x14c   :  { %v191_v58 = vsub.f32 1.0, %v190_v57 }
 0x14e   :  { %v192_v60 = vmul.f32 %v900_v56, %v191_v58 }
 0x150   :  { %v193_v62 = vadd.f32 %v900_v56, %v192_v60 }
 0x152   :  { %v197_v0 = vsel %vm196_vm4, %v900_v56, %v193_v62 }
 0x153   :  { %v202_v1 = vsel %vm199_vm5, %v201_v63, %v197_v0 }
 0x154   :  { %205 = vrot.lane.b32.xlu0 %v202_v1, %s964_s5  ;;  %v210_v5 = vmul.f32 %v202_v1, %v163_v49 }
 0x15c   :  { %207 = vrot.lane.b32.xlu0 %v902_v2, %s965_s15 }
 0x1c6   :  { %v206_v3 = vpop.permute.xlu0 %205 }
 0x1ce   :  { %v208_v4 = vpop.permute.xlu0 %207 }
 0x1cf   :  { %v209_v6 = vmul.f32 %v208_v4, %v206_v3 }
 0x1d1   :  { %v211_v7 = vadd.f32 %v210_v5, %v209_v6 }
 0x1d3   :  { %903 = vtanh.f32 %v211_v7 }
 0x1d9   :  { %v904_v8 = vpop.eup %903 }
 0x1da   :  { %213 = vrot.lane.b32.xlu1 %v904_v8, %s965_s15 }
 0x24c   :  { %v214_v9 = vpop.permute.xlu1 %213 }
 0x24d   :  { %v215_v10 = vmul.f32 %v214_v9, %v206_v3 }
 0x24f   :  { %v216_v11 = vsel %vm157_vm1, %v215_v10, %v211_v7  ;;  %v220_v12 = vsel %vm217_vm6, %v215_v10, 0.0 }
 0x250   :  { %v218_v14 = vsel %vm217_vm6, %v216_v11, %v163_v49  ;;  %221 = vst [vmem:[#allocation3] sm:$0xff] %v220_v12 }
 0x251   :  { %219 = vst [vmem:[#allocation4] sm:$0xff] %v218_v14 }
 0x252 PF:  { %p821_p1 = scmp.le.s32.totalorder %s1481_s0, 1 }
 0x253   :  { %s966_s18 = smov (!%p821_p1), 32   ;;  %s967_s19 = smov (!%p821_p1), 96  }
 0x254   :  { %225 = sbr.rel (%p821_p1) target bundleno = 1042 (0x412), region = 49 }
 0x259   :  { %229 = vmatpush.msra.mxu0 %v1165_v30  ;;  %v228_v32 = vld [vmem:[#allocation4] sm:$0xff]  ;;  %vm282_vm11 = vcmp.gt.s32.totalorder %v1170_v31, 1 }
 0x25a   :  { %v227_v33 = vld [vmem:[#allocation2] sm:$0xff] }
 0x25b   :  { %230 = vmatpush.msra.mxu0 %v1160_v29 }
 0x25d   :  { %231 = vmatpush.msra.mxu0 %v1155_v28 }
 0x25f   :  { %232 = vmatpush.msra.mxu0 %v1150_v27 }
 0x261   :  { %233 = vmatpush.msra.mxu0 %v1145_v26 }
 0x263   :  { %234 = vmatpush.msra.mxu0 %v1140_v25 }
 0x265   :  { %235 = vmatpush.msra.mxu0 %v1135_v24 }
 0x267   :  { %236 = vmatpush.msra.mxu0 %v1130_v23 }
 0x269   :  { %237 = vmatpush.msra.mxu0 %v1125_v22 }
 0x26b   :  { %238 = vmatpush.msra.mxu0 %v1120_v21 }
 0x26d   :  { %239 = vmatpush.msra.mxu0 %v1115_v20 }
 0x26f   :  { %240 = vmatpush.msra.mxu0 %v1110_v19 }
 0x271   :  { %241 = vmatpush.msra.mxu0 %v1105_v18 }
 0x273   :  { %242 = vmatpush.msra.mxu0 %v1099_v17 }
 0x275   :  { %243 = vmatpush.msra.mxu0 %v1094_v16 }
 0x277   :  { %244 = vmatpush.msra.mxu0 %v1089_v15 }
 0x278   :  { %245 = vmatmul.f32.vlgmr.msra.gmra.mxu0 %v228_v32 }
 0x2f5   :  { %v246_v34 = vpop.f32.mrf.mxu0 }
 0x2f6   :  { %v249_v35 = vadd.f32 %v246_v34, %v227_v33 }
 0x2f8   :  { %v822_v36 = vmul.f32 -1.442695, %v249_v35 }
 0x2fa   :  { %905 = vpow2.f32 %v822_v36 }
 0x300   :  { %v906_v37 = vpop.eup %905 }
 0x301   :  { %v253_v38 = vadd.f32 1.0, %v906_v37 }
 0x303   :  { %907 = vrcp.f32 %v253_v38  ;;  %v265_v42 = vand.u32 2147483648, %v253_v38  ;;  %v263_v44 = vand.u32 2147483647, %v253_v38  ;;  %vm259_vm8 = vweird.f32 %v253_v38 }
 0x304   :  { %909 = vtanh.f32 %v249_v35 }
 0x305   :  { %v266_v46 = vor.u32 1.1754944e-38, %v265_v42  ;;  %vm264_vm10 = vcmp.eq.f32.partialorder %v263_v44, 8.507059e+37 }
 0x309   :  { %v908_v39 = vpop.eup %907 }
 0x30a   :  { %v255_v40 = vmul.f32 %v908_v39, %v253_v38  ;;  %vm260_vm7 = vweird.f32 %v908_v39  ;;  %v910_v49 = vpop.eup %909 }
 0x30b   :  { %vm261_vm9 = vmor %vm259_vm8, %vm260_vm7 }
 0x30c   :  { %v256_v41 = vsub.f32 1.0, %v255_v40 }
 0x30e   :  { %v257_v43 = vmul.f32 %v908_v39, %v256_v41 }
 0x310   :  { %v258_v45 = vadd.f32 %v908_v39, %v257_v43 }
 0x312   :  { %v262_v47 = vsel %vm261_vm9, %v908_v39, %v258_v45 }
 0x313   :  { %v267_v48 = vsel %vm264_vm10, %v266_v46, %v262_v47 }
 0x314   :  { %270 = vrot.lane.b32.xlu0 %v267_v48, %s966_s18  ;;  %v275_v52 = vmul.f32 %v267_v48, %v228_v32 }
 0x31c   :  { %272 = vrot.lane.b32.xlu0 %v910_v49, %s967_s19 }
 0x386   :  { %v271_v50 = vpop.permute.xlu0 %270 }
 0x38e   :  { %v273_v51 = vpop.permute.xlu0 %272 }
 0x38f   :  { %v274_v53 = vmul.f32 %v273_v51, %v271_v50 }
 0x391   :  { %v276_v54 = vadd.f32 %v275_v52, %v274_v53 }
 0x393   :  { %911 = vtanh.f32 %v276_v54 }
 0x399   :  { %v912_v55 = vpop.eup %911 }
 0x39a   :  { %278 = vrot.lane.b32.xlu1 %v912_v55, %s967_s19 }
 0x40c   :  { %v279_v56 = vpop.permute.xlu1 %278 }
 0x40d   :  { %v280_v57 = vmul.f32 %v279_v56, %v271_v50 }
 0x40f   :  { %v281_v58 = vsel %vm157_vm1, %v280_v57, %v276_v54  ;;  %v285_v59 = vsel %vm282_vm11, %v280_v57, 0.0 }
 0x410   :  { %v283_v60 = vsel %vm282_vm11, %v281_v58, %v228_v32  ;;  %287 = vst [vmem:[#allocation3 + $0x18] sm:$0xff] %v285_v59 }
 0x411   :  { %284 = vst [vmem:[#allocation4] sm:$0xff] %v283_v60 }
 0x412 PF:  { %p823_p2 = scmp.le.s32.totalorder %s1481_s0, 2 }
 0x413   :  { %s968_s22 = smov (!%p823_p2), 32   ;;  %s969_s23 = smov (!%p823_p2), 96  }
 0x414   :  { %291 = sbr.rel (%p823_p2) target bundleno = 1490 (0x5d2), region = 53 }
 0x419   :  { %295 = vmatpush.msra.mxu0 %v1165_v30  ;;  %v294_v61 = vld [vmem:[#allocation4] sm:$0xff]  ;;  %v293_v62 = vld [vmem:[#allocation2 + $0x18] sm:$0xff]  ;;  %vm348_vm0 = vcmp.gt.s32.totalorder %v1170_v31, 2 }
 0x41b   :  { %296 = vmatpush.msra.mxu0 %v1160_v29 }
 0x41d   :  { %297 = vmatpush.msra.mxu0 %v1155_v28 }
 0x41f   :  { %298 = vmatpush.msra.mxu0 %v1150_v27 }
 0x421   :  { %299 = vmatpush.msra.mxu0 %v1145_v26 }
 0x423   :  { %300 = vmatpush.msra.mxu0 %v1140_v25 }
 0x425   :  { %301 = vmatpush.msra.mxu0 %v1135_v24 }
 0x427   :  { %302 = vmatpush.msra.mxu0 %v1130_v23 }
 0x429   :  { %303 = vmatpush.msra.mxu0 %v1125_v22 }
 0x42b   :  { %304 = vmatpush.msra.mxu0 %v1120_v21 }
 0x42d   :  { %305 = vmatpush.msra.mxu0 %v1115_v20 }
 0x42f   :  { %306 = vmatpush.msra.mxu0 %v1110_v19 }
 0x431   :  { %307 = vmatpush.msra.mxu0 %v1105_v18 }
 0x433   :  { %308 = vmatpush.msra.mxu0 %v1099_v17 }
 0x435   :  { %309 = vmatpush.msra.mxu0 %v1094_v16 }
 0x437   :  { %310 = vmatpush.msra.mxu0 %v1089_v15 }
 0x438   :  { %311 = vmatmul.f32.vlgmr.msra.gmra.mxu0 %v294_v61 }
 0x4b5   :  { %v312_v63 = vpop.f32.mrf.mxu0 }
 0x4b6   :  { %v315_v0 = vadd.f32 %v312_v63, %v293_v62 }
 0x4b8   :  { %v824_v1 = vmul.f32 -1.442695, %v315_v0 }
 0x4ba   :  { %913 = vpow2.f32 %v824_v1 }
 0x4c0   :  { %v914_v2 = vpop.eup %913 }
 0x4c1   :  { %v319_v3 = vadd.f32 1.0, %v914_v2 }
 0x4c3   :  { %915 = vrcp.f32 %v319_v3  ;;  %v331_v7 = vand.u32 2147483648, %v319_v3  ;;  %v329_v9 = vand.u32 2147483647, %v319_v3  ;;  %vm325_vm13 = vweird.f32 %v319_v3 }
 0x4c4   :  { %917 = vtanh.f32 %v315_v0 }
 0x4c5   :  { %v332_v11 = vor.u32 1.1754944e-38, %v331_v7  ;;  %vm330_vm15 = vcmp.eq.f32.partialorder %v329_v9, 8.507059e+37 }
 0x4c9   :  { %v916_v4 = vpop.eup %915 }
 0x4ca   :  { %v321_v5 = vmul.f32 %v916_v4, %v319_v3  ;;  %vm326_vm12 = vweird.f32 %v916_v4  ;;  %v918_v32 = vpop.eup %917 }
 0x4cb   :  { %vm327_vm14 = vmor %vm325_vm13, %vm326_vm12 }
 0x4cc   :  { %v322_v6 = vsub.f32 1.0, %v321_v5 }
 0x4ce   :  { %v323_v8 = vmul.f32 %v916_v4, %v322_v6 }
 0x4d0   :  { %v324_v10 = vadd.f32 %v916_v4, %v323_v8 }
 0x4d2   :  { %v328_v12 = vsel %vm327_vm14, %v916_v4, %v324_v10 }
 0x4d3   :  { %v333_v14 = vsel %vm330_vm15, %v332_v11, %v328_v12 }
 0x4d4   :  { %336 = vrot.lane.b32.xlu0 %v333_v14, %s968_s22  ;;  %v341_v35 = vmul.f32 %v333_v14, %v294_v61 }
 0x4dc   :  { %338 = vrot.lane.b32.xlu0 %v918_v32, %s969_s23 }
 0x546   :  { %v337_v33 = vpop.permute.xlu0 %336 }
 0x54e   :  { %v339_v34 = vpop.permute.xlu0 %338 }
 0x54f   :  { %v340_v36 = vmul.f32 %v339_v34, %v337_v33 }
 0x551   :  { %v342_v37 = vadd.f32 %v341_v35, %v340_v36 }
 0x553   :  { %919 = vtanh.f32 %v342_v37 }
 0x559   :  { %v920_v38 = vpop.eup %919 }
 0x55a   :  { %344 = vrot.lane.b32.xlu1 %v920_v38, %s969_s23 }
 0x5cc   :  { %v345_v39 = vpop.permute.xlu1 %344 }
 0x5cd   :  { %v346_v40 = vmul.f32 %v345_v39, %v337_v33 }
 0x5cf   :  { %v347_v41 = vsel %vm157_vm1, %v346_v40, %v342_v37  ;;  %v351_v42 = vsel %vm348_vm0, %v346_v40, 0.0 }
 0x5d0   :  { %v349_v43 = vsel %vm348_vm0, %v347_v41, %v294_v61  ;;  %353 = vst [vmem:[#allocation3 + $0x10] sm:$0xff] %v351_v42 }
 0x5d1   :  { %350 = vst [vmem:[#allocation4] sm:$0xff] %v349_v43 }
 0x5d2 PF:  { %p825_p3 = scmp.le.s32.totalorder %s1481_s0, 3 }
 0x5d3   :  { %s970_s25 = smov (!%p825_p3), 32   ;;  %s971_s26 = smov (!%p825_p3), 96  }
 0x5d4   :  { %357 = sbr.rel (%p825_p3) target bundleno = 1938 (0x792), region = 57 }
 0x5d9   :  { %361 = vmatpush.msra.mxu0 %v1165_v30  ;;  %v360_v44 = vld [vmem:[#allocation4] sm:$0xff]  ;;  %v359_v45 = vld [vmem:[#allocation2 + $0x10] sm:$0xff]  ;;  %vm414_vm6 = vcmp.gt.s32.totalorder %v1170_v31, 3 }
 0x5db   :  { %362 = vmatpush.msra.mxu0 %v1160_v29 }
 0x5dd   :  { %363 = vmatpush.msra.mxu0 %v1155_v28 }
 0x5df   :  { %364 = vmatpush.msra.mxu0 %v1150_v27 }
 0x5e1   :  { %365 = vmatpush.msra.mxu0 %v1145_v26 }
 0x5e3   :  { %366 = vmatpush.msra.mxu0 %v1140_v25 }
 0x5e5   :  { %367 = vmatpush.msra.mxu0 %v1135_v24 }
 0x5e7   :  { %368 = vmatpush.msra.mxu0 %v1130_v23 }
 0x5e9   :  { %369 = vmatpush.msra.mxu0 %v1125_v22 }
 0x5eb   :  { %370 = vmatpush.msra.mxu0 %v1120_v21 }
 0x5ed   :  { %371 = vmatpush.msra.mxu0 %v1115_v20 }
 0x5ef   :  { %372 = vmatpush.msra.mxu0 %v1110_v19 }
 0x5f1   :  { %373 = vmatpush.msra.mxu0 %v1105_v18 }
 0x5f3   :  { %374 = vmatpush.msra.mxu0 %v1099_v17 }
 0x5f5   :  { %375 = vmatpush.msra.mxu0 %v1094_v16 }
 0x5f7   :  { %376 = vmatpush.msra.mxu0 %v1089_v15 }
 0x5f8   :  { %377 = vmatmul.f32.vlgmr.msra.gmra.mxu0 %v360_v44 }
 0x675   :  { %v378_v46 = vpop.f32.mrf.mxu0 }
 0x676   :  { %v381_v47 = vadd.f32 %v378_v46, %v359_v45 }
 0x678   :  { %v826_v48 = vmul.f32 -1.442695, %v381_v47 }
 0x67a   :  { %921 = vpow2.f32 %v826_v48 }
 0x680   :  { %v922_v49 = vpop.eup %921 }
 0x681   :  { %v385_v50 = vadd.f32 1.0, %v922_v49 }
 0x683   :  { %923 = vrcp.f32 %v385_v50  ;;  %v397_v54 = vand.u32 2147483648, %v385_v50  ;;  %v395_v56 = vand.u32 2147483647, %v385_v50  ;;  %vm391_vm3 = vweird.f32 %v385_v50 }
 0x684   :  { %925 = vtanh.f32 %v381_v47 }
 0x685   :  { %v398_v58 = vor.u32 1.1754944e-38, %v397_v54  ;;  %vm396_vm5 = vcmp.eq.f32.partialorder %v395_v56, 8.507059e+37 }
 0x689   :  { %v924_v51 = vpop.eup %923 }
 0x68a   :  { %v387_v52 = vmul.f32 %v924_v51, %v385_v50  ;;  %vm392_vm2 = vweird.f32 %v924_v51  ;;  %v926_v61 = vpop.eup %925 }
 0x68b   :  { %vm393_vm4 = vmor %vm391_vm3, %vm392_vm2 }
 0x68c   :  { %v388_v53 = vsub.f32 1.0, %v387_v52 }
 0x68e   :  { %v389_v55 = vmul.f32 %v924_v51, %v388_v53 }
 0x690   :  { %v390_v57 = vadd.f32 %v924_v51, %v389_v55 }
 0x692   :  { %v394_v59 = vsel %vm393_vm4, %v924_v51, %v390_v57 }
 0x693   :  { %v399_v60 = vsel %vm396_vm5, %v398_v58, %v394_v59 }
 0x694   :  { %402 = vrot.lane.b32.xlu0 %v399_v60, %s970_s25  ;;  %v407_v0 = vmul.f32 %v399_v60, %v360_v44 }
 0x69c   :  { %404 = vrot.lane.b32.xlu0 %v926_v61, %s971_s26 }
 0x706   :  { %v403_v62 = vpop.permute.xlu0 %402 }
 0x70e   :  { %v405_v63 = vpop.permute.xlu0 %404 }
 0x70f   :  { %v406_v1 = vmul.f32 %v405_v63, %v403_v62 }
 0x711   :  { %v408_v2 = vadd.f32 %v407_v0, %v406_v1 }
 0x713   :  { %927 = vtanh.f32 %v408_v2 }
 0x719   :  { %v928_v3 = vpop.eup %927 }
 0x71a   :  { %410 = vrot.lane.b32.xlu1 %v928_v3, %s971_s26 }
 0x78c   :  { %v411_v4 = vpop.permute.xlu1 %410 }
 0x78d   :  { %v412_v5 = vmul.f32 %v411_v4, %v403_v62 }
 0x78f   :  { %v413_v6 = vsel %vm157_vm1, %v412_v5, %v408_v2  ;;  %v417_v7 = vsel %vm414_vm6, %v412_v5, 0.0 }
 0x790   :  { %v415_v8 = vsel %vm414_vm6, %v413_v6, %v360_v44  ;;  %419 = vst [vmem:[#allocation3 + $0x20] sm:$0xff] %v417_v7 }
 0x791   :  { %416 = vst [vmem:[#allocation4] sm:$0xff] %v415_v8 }
 0x792 PF:  { %p827_p4 = scmp.le.s32.totalorder %s1481_s0, 4 }
 0x793   :  { %s972_s29 = smov (!%p827_p4), 32   ;;  %s973_s30 = smov (!%p827_p4), 96  }
 0x794   :  { %423 = sbr.rel (%p827_p4) target bundleno = 2386 (0x952), region = 61 }
 0x799   :  { %427 = vmatpush.msra.mxu0 %v1165_v30  ;;  %v426_v9 = vld [vmem:[#allocation4] sm:$0xff]  ;;  %v425_v10 = vld [vmem:[#allocation2 + $0x8] sm:$0xff]  ;;  %vm480_vm11 = vcmp.gt.s32.totalorder %v1170_v31, 4 }
 0x79b   :  { %428 = vmatpush.msra.mxu0 %v1160_v29 }
 0x79d   :  { %429 = vmatpush.msra.mxu0 %v1155_v28 }
 0x79f   :  { %430 = vmatpush.msra.mxu0 %v1150_v27 }
 0x7a1   :  { %431 = vmatpush.msra.mxu0 %v1145_v26 }
 0x7a3   :  { %432 = vmatpush.msra.mxu0 %v1140_v25 }
 0x7a5   :  { %433 = vmatpush.msra.mxu0 %v1135_v24 }
 0x7a7   :  { %434 = vmatpush.msra.mxu0 %v1130_v23 }
 0x7a9   :  { %435 = vmatpush.msra.mxu0 %v1125_v22 }
 0x7ab   :  { %436 = vmatpush.msra.mxu0 %v1120_v21 }
 0x7ad   :  { %437 = vmatpush.msra.mxu0 %v1115_v20 }
 0x7af   :  { %438 = vmatpush.msra.mxu0 %v1110_v19 }
 0x7b1   :  { %439 = vmatpush.msra.mxu0 %v1105_v18 }
 0x7b3   :  { %440 = vmatpush.msra.mxu0 %v1099_v17 }
 0x7b5   :  { %441 = vmatpush.msra.mxu0 %v1094_v16 }
 0x7b7   :  { %442 = vmatpush.msra.mxu0 %v1089_v15 }
 0x7b8   :  { %443 = vmatmul.f32.vlgmr.msra.gmra.mxu0 %v426_v9 }
 0x835   :  { %v444_v11 = vpop.f32.mrf.mxu0 }
 0x836   :  { %v447_v12 = vadd.f32 %v444_v11, %v425_v10 }
 0x838   :  { %v828_v14 = vmul.f32 -1.442695, %v447_v12 }
 0x83a   :  { %929 = vpow2.f32 %v828_v14 }
 0x840   :  { %v930_v32 = vpop.eup %929 }
 0x841   :  { %v451_v33 = vadd.f32 1.0, %v930_v32 }
 0x843   :  { %931 = vrcp.f32 %v451_v33  ;;  %v463_v37 = vand.u32 2147483648, %v451_v33  ;;  %v461_v39 = vand.u32 2147483647, %v451_v33  ;;  %vm457_vm8 = vweird.f32 %v451_v33 }
 0x844   :  { %933 = vtanh.f32 %v447_v12 }
 0x845   :  { %v464_v41 = vor.u32 1.1754944e-38, %v463_v37  ;;  %vm462_vm10 = vcmp.eq.f32.partialorder %v461_v39, 8.507059e+37 }
 0x849   :  { %v932_v34 = vpop.eup %931 }
 0x84a   :  { %v453_v35 = vmul.f32 %v932_v34, %v451_v33  ;;  %vm458_vm7 = vweird.f32 %v932_v34  ;;  %v934_v44 = vpop.eup %933 }
 0x84b   :  { %vm459_vm9 = vmor %vm457_vm8, %vm458_vm7 }
 0x84c   :  { %v454_v36 = vsub.f32 1.0, %v453_v35 }
 0x84e   :  { %v455_v38 = vmul.f32 %v932_v34, %v454_v36 }
 0x850   :  { %v456_v40 = vadd.f32 %v932_v34, %v455_v38 }
 0x852   :  { %v460_v42 = vsel %vm459_vm9, %v932_v34, %v456_v40 }
 0x853   :  { %v465_v43 = vsel %vm462_vm10, %v464_v41, %v460_v42 }
 0x854   :  { %468 = vrot.lane.b32.xlu0 %v465_v43, %s972_s29  ;;  %v473_v47 = vmul.f32 %v465_v43, %v426_v9 }
 0x85c   :  { %470 = vrot.lane.b32.xlu0 %v934_v44, %s973_s30 }
 0x8c6   :  { %v469_v45 = vpop.permute.xlu0 %468 }
 0x8ce   :  { %v471_v46 = vpop.permute.xlu0 %470 }
 0x8cf   :  { %v472_v48 = vmul.f32 %v471_v46, %v469_v45 }
 0x8d1   :  { %v474_v49 = vadd.f32 %v473_v47, %v472_v48 }
 0x8d3   :  { %935 = vtanh.f32 %v474_v49 }
 0x8d9   :  { %v936_v50 = vpop.eup %935 }
 0x8da   :  { %476 = vrot.lane.b32.xlu1 %v936_v50, %s973_s30 }
 0x94c   :  { %v477_v51 = vpop.permute.xlu1 %476 }
 0x94d   :  { %v478_v52 = vmul.f32 %v477_v51, %v469_v45 }
 0x94f   :  { %v479_v53 = vsel %vm157_vm1, %v478_v52, %v474_v49  ;;  %v483_v54 = vsel %vm480_vm11, %v478_v52, 0.0 }
 0x950   :  { %v481_v55 = vsel %vm480_vm11, %v479_v53, %v426_v9  ;;  %485 = vst [vmem:[#allocation3 + $0x28] sm:$0xff] %v483_v54 }
 0x951   :  { %482 = vst [vmem:[#allocation4] sm:$0xff] %v481_v55 }
 0x952 PF:  { %p829_p5 = scmp.le.s32.totalorder %s1481_s0, 5 }
 0x953   :  { %s974_s13 = smov (!%p829_p5), 32   ;;  %s975_s14 = smov (!%p829_p5), 96  }
 0x954   :  { %489 = sbr.rel (%p829_p5) target bundleno = 2834 (0xb12), region = 65 }
 0x959   :  { %493 = vmatpush.msra.mxu0 %v1165_v30  ;;  %v492_v56 = vld [vmem:[#allocation4] sm:$0xff]  ;;  %vm546_vm0 = vcmp.gt.s32.totalorder %v1170_v31, 5 }
 0x95a   :  { %v491_v57 = vld [vmem:[#allocation2 + $0x20] sm:$0xff] }
 0x95b   :  { %494 = vmatpush.msra.mxu0 %v1160_v29 }
 0x95d   :  { %495 = vmatpush.msra.mxu0 %v1155_v28 }
 0x95f   :  { %496 = vmatpush.msra.mxu0 %v1150_v27 }
 0x961   :  { %497 = vmatpush.msra.mxu0 %v1145_v26 }
 0x963   :  { %498 = vmatpush.msra.mxu0 %v1140_v25 }
 0x965   :  { %499 = vmatpush.msra.mxu0 %v1135_v24 }
 0x967   :  { %500 = vmatpush.msra.mxu0 %v1130_v23 }
 0x969   :  { %501 = vmatpush.msra.mxu0 %v1125_v22 }
 0x96b   :  { %502 = vmatpush.msra.mxu0 %v1120_v21 }
 0x96d   :  { %503 = vmatpush.msra.mxu0 %v1115_v20 }
 0x96f   :  { %504 = vmatpush.msra.mxu0 %v1110_v19 }
 0x971   :  { %505 = vmatpush.msra.mxu0 %v1105_v18 }
 0x973   :  { %506 = vmatpush.msra.mxu0 %v1099_v17 }
 0x975   :  { %507 = vmatpush.msra.mxu0 %v1094_v16 }
 0x977   :  { %508 = vmatpush.msra.mxu0 %v1089_v15 }
 0x978   :  { %509 = vmatmul.f32.vlgmr.msra.gmra.mxu0 %v492_v56 }
 0x9f5   :  { %v510_v58 = vpop.f32.mrf.mxu0 }
 0x9f6   :  { %v513_v59 = vadd.f32 %v510_v58, %v491_v57 }
 0x9f8   :  { %v830_v60 = vmul.f32 -1.442695, %v513_v59 }
 0x9fa   :  { %937 = vpow2.f32 %v830_v60 }
 0xa00   :  { %v938_v61 = vpop.eup %937 }
 0xa01   :  { %v517_v62 = vadd.f32 1.0, %v938_v61 }
 0xa03   :  { %939 = vrcp.f32 %v517_v62  ;;  %v529_v2 = vand.u32 2147483648, %v517_v62  ;;  %v527_v4 = vand.u32 2147483647, %v517_v62  ;;  %vm523_vm13 = vweird.f32 %v517_v62 }
 0xa04   :  { %941 = vtanh.f32 %v513_v59 }
 0xa05   :  { %v530_v6 = vor.u32 1.1754944e-38, %v529_v2  ;;  %vm528_vm15 = vcmp.eq.f32.partialorder %v527_v4, 8.507059e+37 }
 0xa09   :  { %v940_v63 = vpop.eup %939 }
 0xa0a   :  { %v519_v0 = vmul.f32 %v940_v63, %v517_v62  ;;  %vm524_vm12 = vweird.f32 %v940_v63  ;;  %v942_v9 = vpop.eup %941 }
 0xa0b   :  { %vm525_vm14 = vmor %vm523_vm13, %vm524_vm12 }
 0xa0c   :  { %v520_v1 = vsub.f32 1.0, %v519_v0 }
 0xa0e   :  { %v521_v3 = vmul.f32 %v940_v63, %v520_v1 }
 0xa10   :  { %v522_v5 = vadd.f32 %v940_v63, %v521_v3 }
 0xa12   :  { %v526_v7 = vsel %vm525_vm14, %v940_v63, %v522_v5 }
 0xa13   :  { %v531_v8 = vsel %vm528_vm15, %v530_v6, %v526_v7 }
 0xa14   :  { %534 = vrot.lane.b32.xlu0 %v531_v8, %s974_s13  ;;  %v539_v12 = vmul.f32 %v531_v8, %v492_v56 }
 0xa1c   :  { %536 = vrot.lane.b32.xlu0 %v942_v9, %s975_s14 }
 0xa86   :  { %v535_v10 = vpop.permute.xlu0 %534 }
 0xa8e   :  { %v537_v11 = vpop.permute.xlu0 %536 }
 0xa8f   :  { %v538_v14 = vmul.f32 %v537_v11, %v535_v10 }
 0xa91   :  { %v540_v32 = vadd.f32 %v539_v12, %v538_v14 }
 0xa93   :  { %943 = vtanh.f32 %v540_v32 }
 0xa99   :  { %v944_v33 = vpop.eup %943 }
 0xa9a   :  { %542 = vrot.lane.b32.xlu1 %v944_v33, %s975_s14 }
 0xb0c   :  { %v543_v34 = vpop.permute.xlu1 %542 }
 0xb0d   :  { %v544_v35 = vmul.f32 %v543_v34, %v535_v10 }
 0xb0f   :  { %v545_v36 = vsel %vm157_vm1, %v544_v35, %v540_v32  ;;  %v549_v37 = vsel %vm546_vm0, %v544_v35, 0.0 }
 0xb10   :  { %v547_v38 = vsel %vm546_vm0, %v545_v36, %v492_v56  ;;  %551 = vst [vmem:[#allocation3 + $0x8] sm:$0xff] %v549_v37 }
 0xb11   :  { %548 = vst [vmem:[#allocation4] sm:$0xff] %v547_v38 }
 0xb12 PF:  { %p831_p6 = scmp.le.s32.totalorder %s1481_s0, 6 }
 0xb13   :  { %s976_s5 = smov (!%p831_p6), 32   ;;  %s977_s15 = smov (!%p831_p6), 96  }
 0xb14   :  { %555 = sbr.rel (%p831_p6) target bundleno = 3282 (0xcd2), region = 69 }
 0xb19   :  { %559 = vmatpush.msra.mxu0 %v1165_v30  ;;  %v558_v39 = vld [vmem:[#allocation4] sm:$0xff]  ;;  %v557_v40 = vld [vmem:[#allocation2 + $0x28] sm:$0xff]  ;;  %vm612_vm6 = vcmp.gt.s32.totalorder %v1170_v31, 6 }
 0xb1b   :  { %560 = vmatpush.msra.mxu0 %v1160_v29 }
 0xb1d   :  { %561 = vmatpush.msra.mxu0 %v1155_v28 }
 0xb1f   :  { %562 = vmatpush.msra.mxu0 %v1150_v27 }
 0xb21   :  { %563 = vmatpush.msra.mxu0 %v1145_v26 }
 0xb23   :  { %564 = vmatpush.msra.mxu0 %v1140_v25 }
 0xb25   :  { %565 = vmatpush.msra.mxu0 %v1135_v24 }
 0xb27   :  { %566 = vmatpush.msra.mxu0 %v1130_v23 }
 0xb29   :  { %567 = vmatpush.msra.mxu0 %v1125_v22 }
 0xb2b   :  { %568 = vmatpush.msra.mxu0 %v1120_v21 }
 0xb2d   :  { %569 = vmatpush.msra.mxu0 %v1115_v20 }
 0xb2f   :  { %570 = vmatpush.msra.mxu0 %v1110_v19 }
 0xb31   :  { %571 = vmatpush.msra.mxu0 %v1105_v18 }
 0xb33   :  { %572 = vmatpush.msra.mxu0 %v1099_v17 }
 0xb35   :  { %573 = vmatpush.msra.mxu0 %v1094_v16 }
 0xb37   :  { %574 = vmatpush.msra.mxu0 %v1089_v15 }
 0xb38   :  { %575 = vmatmul.f32.vlgmr.msra.gmra.mxu0 %v558_v39 }
 0xbb5   :  { %v576_v41 = vpop.f32.mrf.mxu0 }
 0xbb6   :  { %v579_v42 = vadd.f32 %v576_v41, %v557_v40 }
 0xbb8   :  { %v832_v43 = vmul.f32 -1.442695, %v579_v42 }
 0xbba   :  { %945 = vpow2.f32 %v832_v43 }
 0xbc0   :  { %v946_v44 = vpop.eup %945 }
 0xbc1   :  { %v583_v45 = vadd.f32 1.0, %v946_v44 }
 0xbc3   :  { %947 = vrcp.f32 %v583_v45  ;;  %v595_v49 = vand.u32 2147483648, %v583_v45  ;;  %v593_v51 = vand.u32 2147483647, %v583_v45  ;;  %vm589_vm3 = vweird.f32 %v583_v45 }
 0xbc4   :  { %949 = vtanh.f32 %v579_v42 }
 0xbc5   :  { %v596_v53 = vor.u32 1.1754944e-38, %v595_v49  ;;  %vm594_vm5 = vcmp.eq.f32.partialorder %v593_v51, 8.507059e+37 }
 0xbc9   :  { %v948_v46 = vpop.eup %947 }
 0xbca   :  { %v585_v47 = vmul.f32 %v948_v46, %v583_v45  ;;  %vm590_vm2 = vweird.f32 %v948_v46  ;;  %v950_v56 = vpop.eup %949 }
 0xbcb   :  { %vm591_vm4 = vmor %vm589_vm3, %vm590_vm2 }
 0xbcc   :  { %v586_v48 = vsub.f32 1.0, %v585_v47 }
 0xbce   :  { %v587_v50 = vmul.f32 %v948_v46, %v586_v48 }
 0xbd0   :  { %v588_v52 = vadd.f32 %v948_v46, %v587_v50 }
 0xbd2   :  { %v592_v54 = vsel %vm591_vm4, %v948_v46, %v588_v52 }
 0xbd3   :  { %v597_v55 = vsel %vm594_vm5, %v596_v53, %v592_v54 }
 0xbd4   :  { %600 = vrot.lane.b32.xlu0 %v597_v55, %s976_s5  ;;  %v605_v59 = vmul.f32 %v597_v55, %v558_v39 }
 0xbdc   :  { %602 = vrot.lane.b32.xlu0 %v950_v56, %s977_s15 }
 0xc46   :  { %v601_v57 = vpop.permute.xlu0 %600 }
 0xc4e   :  { %v603_v58 = vpop.permute.xlu0 %602 }
 0xc4f   :  { %v604_v60 = vmul.f32 %v603_v58, %v601_v57 }
 0xc51   :  { %v606_v61 = vadd.f32 %v605_v59, %v604_v60 }
 0xc53   :  { %951 = vtanh.f32 %v606_v61 }
 0xc59   :  { %v952_v62 = vpop.eup %951 }
 0xc5a   :  { %608 = vrot.lane.b32.xlu1 %v952_v62, %s977_s15 }
 0xccc   :  { %v609_v63 = vpop.permute.xlu1 %608 }
 0xccd   :  { %v610_v0 = vmul.f32 %v609_v63, %v601_v57 }
 0xccf   :  { %v611_v1 = vsel %vm157_vm1, %v610_v0, %v606_v61  ;;  %v615_v2 = vsel %vm612_vm6, %v610_v0, 0.0 }
 0xcd0   :  { %v613_v3 = vsel %vm612_vm6, %v611_v1, %v558_v39  ;;  %617 = vst [vmem:[#allocation3 + $0x30] sm:$0xff] %v615_v2 }
 0xcd1   :  { %614 = vst [vmem:[#allocation4] sm:$0xff] %v613_v3 }
 0xcd2 PF:  { %p833_p7 = scmp.le.s32.totalorder %s1481_s0, 7 }
 0xcd3   :  { %s978_s0 = smov (!%p833_p7), 32   ;;  %s979_s18 = smov (!%p833_p7), 96  }
 0xcd4   :  { %621 = sbr.rel (%p833_p7) target bundleno = 3730 (0xe92), region = 73 }
 0xcd9   :  { %625 = vmatpush.msra.mxu0 %v1165_v30  ;;  %vm678_vm11 = vcmp.gt.s32.totalorder %v1170_v31, 7 }
 0xcdb   :  { %626 = vmatpush.msra.mxu0 %v1160_v29 }
 0xcdd   :  { %627 = vmatpush.msra.mxu0 %v1155_v28 }
 0xcdf   :  { %628 = vmatpush.msra.mxu0 %v1150_v27 }
 0xce1   :  { %629 = vmatpush.msra.mxu0 %v1145_v26  ;;  %v624_v26 = vld [vmem:[#allocation4] sm:$0xff] }
 0xce3   :  { %630 = vmatpush.msra.mxu0 %v1140_v25 }
 0xce5   :  { %631 = vmatpush.msra.mxu0 %v1135_v24  ;;  %v623_v24 = vld [vmem:[#allocation2 + $0x38] sm:$0xff] }
 0xce7   :  { %632 = vmatpush.msra.mxu0 %v1130_v23 }
 0xce9   :  { %633 = vmatpush.msra.mxu0 %v1125_v22 }
 0xceb   :  { %634 = vmatpush.msra.mxu0 %v1120_v21 }
 0xced   :  { %635 = vmatpush.msra.mxu0 %v1115_v20 }
 0xcef   :  { %636 = vmatpush.msra.mxu0 %v1110_v19 }
 0xcf1   :  { %637 = vmatpush.msra.mxu0 %v1105_v18 }
 0xcf3   :  { %638 = vmatpush.msra.mxu0 %v1099_v17 }
 0xcf5   :  { %639 = vmatpush.msra.mxu0 %v1094_v16 }
 0xcf7   :  { %640 = vmatpush.msra.mxu0 %v1089_v15 }
 0xcf8   :  { %641 = vmatmul.f32.vlgmr.msra.gmra.mxu0 %v624_v26 }
 0xd75   :  { %v642_v23 = vpop.f32.mrf.mxu0 }
 0xd76   :  { %v645_v25 = vadd.f32 %v642_v23, %v623_v24 }
 0xd78   :  { %v834_v22 = vmul.f32 -1.442695, %v645_v25 }
 0xd7a   :  { %953 = vpow2.f32 %v834_v22 }
 0xd80   :  { %v954_v21 = vpop.eup %953 }
 0xd81   :  { %v649_v27 = vadd.f32 1.0, %v954_v21 }
 0xd83   :  { %955 = vrcp.f32 %v649_v27  ;;  %v661_v18 = vand.u32 2147483648, %v649_v27  ;;  %v659_v17 = vand.u32 2147483647, %v649_v27  ;;  %vm655_vm8 = vweird.f32 %v649_v27 }
 0xd84   :  { %957 = vtanh.f32 %v645_v25 }
 0xd85   :  { %v662_v15 = vor.u32 1.1754944e-38, %v661_v18  ;;  %vm660_vm10 = vcmp.eq.f32.partialorder %v659_v17, 8.507059e+37 }
 0xd89   :  { %v956_v20 = vpop.eup %955 }
 0xd8a   :  { %v651_v19 = vmul.f32 %v956_v20, %v649_v27  ;;  %vm656_vm7 = vweird.f32 %v956_v20  ;;  %v958_v5 = vpop.eup %957 }
 0xd8b   :  { %vm657_vm9 = vmor %vm655_vm8, %vm656_vm7 }
 0xd8c   :  { %v652_v28 = vsub.f32 1.0, %v651_v19 }
 0xd8e   :  { %v653_v29 = vmul.f32 %v956_v20, %v652_v28 }
 0xd90   :  { %v654_v16 = vadd.f32 %v956_v20, %v653_v29 }
 0xd92   :  { %v658_v30 = vsel %vm657_vm9, %v956_v20, %v654_v16 }
 0xd93   :  { %v663_v4 = vsel %vm660_vm10, %v662_v15, %v658_v30 }
 0xd94   :  { %666 = vrot.lane.b32.xlu0 %v663_v4, %s978_s0  ;;  %v671_v8 = vmul.f32 %v663_v4, %v624_v26 }
 0xd9c   :  { %668 = vrot.lane.b32.xlu0 %v958_v5, %s979_s18 }
 0xe06   :  { %v667_v6 = vpop.permute.xlu0 %666 }
 0xe0e   :  { %v669_v7 = vpop.permute.xlu0 %668 }
 0xe0f   :  { %v670_v9 = vmul.f32 %v669_v7, %v667_v6 }
 0xe11   :  { %v672_v10 = vadd.f32 %v671_v8, %v670_v9 }
 0xe13   :  { %959 = vtanh.f32 %v672_v10 }
 0xe19   :  { %v960_v11 = vpop.eup %959 }
 0xe1a   :  { %674 = vrot.lane.b32.xlu1 %v960_v11, %s979_s18 }
 0xe8c   :  { %v675_v12 = vpop.permute.xlu1 %674 }
 0xe8d   :  { %v676_v14 = vmul.f32 %v675_v12, %v667_v6 }
 0xe8f   :  { %v677_v32 = vsel %vm157_vm1, %v676_v14, %v672_v10  ;;  %v681_v33 = vsel %vm678_vm11, %v676_v14, 0.0 }
 0xe90   :  { %v679_v34 = vsel %vm678_vm11, %v677_v32, %v624_v26  ;;  %683 = vst [vmem:[#allocation3 + $0x38] sm:$0xff] %v681_v33 }
 0xe91   :  { %680 = vst [vmem:[#allocation4] sm:$0xff] %v679_v34 }
 0xe92 PF:  { %v707_v35 = vld [vmem:[%s1482_s6 + $0x78] sm:$0xff]  ;;  %v706_v36 = vld [vmem:[%s1482_s6 + $0x70] sm:$0xff]  ;;  %v705_v13 = vld [vmem:[%s1482_s6 + $0x68] sm:$0xff] }
 0xe93   :  { %847 = vmatpush.msra.mxu2 %v707_v35  ;;  %848 = vmatpush.msra.mxu3 %v707_v35  ;;  %v704_v31 = vld [vmem:[%s1482_s6 + $0x60] sm:$0xff]  ;;  %v777_v37 = vld [vmem:[%s1484_s8 + $0x78] sm:$0xff]  ;;  %v776_v38 = vld [vmem:[%s1484_s8 + $0x70] sm:$0xff] }
 0xe94   :  { %712 = vmatpush.msra.mxu0 %v707_v35  ;;  %v703_v39 = vld [vmem:[%s1482_s6 + $0x58] sm:$0xff]  ;;  %782 = vmatpush.msra.mxu1 %v777_v37  ;;  %v775_v40 = vld [vmem:[%s1484_s8 + $0x68] sm:$0xff]  ;;  %v702_v41 = vld [vmem:[%s1482_s6 + $0x50] sm:$0xff] }
 0xe95   :  { %849 = vmatpush.msra.mxu2 %v706_v36  ;;  %850 = vmatpush.msra.mxu3 %v706_v36  ;;  %v774_v42 = vld [vmem:[%s1484_s8 + $0x60] sm:$0xff]  ;;  %v701_v43 = vld [vmem:[%s1482_s6 + $0x48] sm:$0xff]  ;;  %v773_v44 = vld [vmem:[%s1484_s8 + $0x58] sm:$0xff] }
 0xe96   :  { %713 = vmatpush.msra.mxu0 %v706_v36  ;;  %783 = vmatpush.msra.mxu1 %v776_v38  ;;  %v700_v45 = vld [vmem:[%s1482_s6 + $0x40] sm:$0xff]  ;;  %v772_v46 = vld [vmem:[%s1484_s8 + $0x50] sm:$0xff]  ;;  %v699_v47 = vld [vmem:[%s1482_s6 + $0x38] sm:$0xff] }
 0xe97   :  { %851 = vmatpush.msra.mxu2 %v705_v13  ;;  %852 = vmatpush.msra.mxu3 %v705_v13  ;;  %v771_v48 = vld [vmem:[%s1484_s8 + $0x48] sm:$0xff]  ;;  %v698_v49 = vld [vmem:[%s1482_s6 + $0x30] sm:$0xff]  ;;  %v770_v50 = vld [vmem:[%s1484_s8 + $0x40] sm:$0xff] }
 0xe98   :  { %714 = vmatpush.msra.mxu0 %v705_v13  ;;  %784 = vmatpush.msra.mxu1 %v775_v40  ;;  %v697_v51 = vld [vmem:[%s1482_s6 + $0x28] sm:$0xff]  ;;  %v769_v52 = vld [vmem:[%s1484_s8 + $0x38] sm:$0xff]  ;;  %v696_v53 = vld [vmem:[%s1482_s6 + $0x20] sm:$0xff] }
 0xe99   :  { %853 = vmatpush.msra.mxu2 %v704_v31  ;;  %854 = vmatpush.msra.mxu3 %v704_v31  ;;  %v768_v54 = vld [vmem:[%s1484_s8 + $0x30] sm:$0xff]  ;;  %v695_v55 = vld [vmem:[%s1482_s6 + $0x18] sm:$0xff]  ;;  %v767_v56 = vld [vmem:[%s1484_s8 + $0x28] sm:$0xff] }
 0xe9a   :  { %715 = vmatpush.msra.mxu0 %v704_v31  ;;  %785 = vmatpush.msra.mxu1 %v774_v42  ;;  %v694_v57 = vld [vmem:[%s1482_s6 + $0x10] sm:$0xff]  ;;  %v766_v58 = vld [vmem:[%s1484_s8 + $0x20] sm:$0xff]  ;;  %v693_v59 = vld [vmem:[%s1482_s6 + $0x8] sm:$0xff] }
 0xe9b   :  { %855 = vmatpush.msra.mxu2 %v703_v39  ;;  %856 = vmatpush.msra.mxu3 %v703_v39  ;;  %v765_v60 = vld [vmem:[%s1484_s8 + $0x18] sm:$0xff]  ;;  %v692_v61 = vld [vmem:[%s1482_s6] sm:$0xff]  ;;  %v686_v62 = vld [vmem:[#allocation3 + $0x10] sm:$0xff] }
 0xe9c   :  { %716 = vmatpush.msra.mxu0 %v703_v39  ;;  %786 = vmatpush.msra.mxu1 %v773_v44  ;;  %v689_v63 = vld [vmem:[#allocation3 + $0x8] sm:$0xff]  ;;  %v764_v0 = vld [vmem:[%s1484_s8 + $0x10] sm:$0xff]  ;;  %v684_v1 = vld [vmem:[#allocation3] sm:$0xff] }
 0xe9d   :  { %857 = vmatpush.msra.mxu2 %v702_v41  ;;  %858 = vmatpush.msra.mxu3 %v702_v41  ;;  %v763_v2 = vld [vmem:[%s1484_s8 + $0x8] sm:$0xff]  ;;  %v762_v3 = vld [vmem:[%s1484_s8] sm:$0xff]  ;;  %v690_v23 = vld [vmem:[#allocation3 + $0x30] sm:$0xff] }
 0xe9e   :  { %717 = vmatpush.msra.mxu0 %v702_v41  ;;  %787 = vmatpush.msra.mxu1 %v772_v46  ;;  %v761_v26 = vld [vmem:[#allocation4] sm:$0xff]  ;;  %v685_v25 = vld [vmem:[#allocation3 + $0x18] sm:$0xff]  ;;  %v688_v22 = vld [vmem:[#allocation3 + $0x28] sm:$0xff] }
 0xe9f   :  { %859 = vmatpush.msra.mxu2 %v701_v43  ;;  %860 = vmatpush.msra.mxu3 %v701_v43  ;;  %v687_v24 = vld [vmem:[#allocation3 + $0x20] sm:$0xff]  ;;  %v691_v21 = vld [vmem:[#allocation3 + $0x38] sm:$0xff] }
 0xea0   :  { %718 = vmatpush.msra.mxu0 %v701_v43  ;;  %788 = vmatpush.msra.mxu1 %v771_v48  ;;  %v961_v27 = vld [vmem:[%s1483_s7] ss:$0 sm:$0xff] }
 0xea1   :  { %861 = vmatpush.msra.mxu2 %v700_v45  ;;  %862 = vmatpush.msra.mxu3 %v700_v45  ;;  %v962_v28 = vld [vmem:[%s1485_s9] ss:$0 sm:$0xff] }
 0xea2   :  { %719 = vmatpush.msra.mxu0 %v700_v45  ;;  %789 = vmatpush.msra.mxu1 %v770_v50 }
 0xea3   :  { %863 = vmatpush.msra.mxu2 %v699_v47  ;;  %864 = vmatpush.msra.mxu3 %v699_v47 }
 0xea4   :  { %720 = vmatpush.msra.mxu0 %v699_v47  ;;  %790 = vmatpush.msra.mxu1 %v769_v52 }
 0xea5   :  { %865 = vmatpush.msra.mxu2 %v698_v49  ;;  %866 = vmatpush.msra.mxu3 %v698_v49 }
 0xea6   :  { %721 = vmatpush.msra.mxu0 %v698_v49  ;;  %791 = vmatpush.msra.mxu1 %v768_v54 }
 0xea7   :  { %867 = vmatpush.msra.mxu2 %v697_v51  ;;  %868 = vmatpush.msra.mxu3 %v697_v51 }
 0xea8   :  { %722 = vmatpush.msra.mxu0 %v697_v51  ;;  %792 = vmatpush.msra.mxu1 %v767_v56 }
 0xea9   :  { %869 = vmatpush.msra.mxu2 %v696_v53  ;;  %870 = vmatpush.msra.mxu3 %v696_v53 }
 0xeaa   :  { %723 = vmatpush.msra.mxu0 %v696_v53  ;;  %793 = vmatpush.msra.mxu1 %v766_v58 }
 0xeab   :  { %871 = vmatpush.msra.mxu2 %v695_v55  ;;  %872 = vmatpush.msra.mxu3 %v695_v55 }
 0xeac   :  { %724 = vmatpush.msra.mxu0 %v695_v55  ;;  %794 = vmatpush.msra.mxu1 %v765_v60 }
 0xead   :  { %873 = vmatpush.msra.mxu2 %v694_v57  ;;  %874 = vmatpush.msra.mxu3 %v694_v57 }
 0xeae   :  { %725 = vmatpush.msra.mxu0 %v694_v57  ;;  %795 = vmatpush.msra.mxu1 %v764_v0 }
 0xeaf   :  { %875 = vmatpush.msra.mxu2 %v693_v59  ;;  %876 = vmatpush.msra.mxu3 %v693_v59 }
 0xeb0   :  { %726 = vmatpush.msra.mxu0 %v693_v59  ;;  %796 = vmatpush.msra.mxu1 %v763_v2 }
 0xeb1   :  { %877 = vmatpush.msra.mxu2 %v692_v61  ;;  %878 = vmatpush.msra.mxu3 %v692_v61 }
 0xeb2   :  { %734 = vmatmul.f32.vlgmr.msra.gmra.mxu2 %v686_v62  ;;  %743 = vmatmul.f32.vlgmr.msra.gmra.mxu3 %v689_v63 }
 0xeb3   :  { %727 = vmatpush.msra.mxu0 %v692_v61  ;;  %797 = vmatpush.msra.mxu1 %v762_v3 }
 0xeb4   :  { %728 = vmatmul.f32.vlgmr.msra.gmra.mxu0 %v684_v1  ;;  %798 = vmatmul.f32.vlgmr.msra.gmra.mxu1 %v761_v26 }
 0xeba   :  { %737 = vmatmul.f32.gmra.mxu2 %v687_v24  ;;  %746 = vmatmul.f32.gmra.mxu3 %v690_v23 }
 0xebc   :  { %731 = vmatmul.f32.gmra.mxu0 %v685_v25 }
 0xec2   :  { %740 = vmatmul.f32.gmra.mxu2 %v688_v22  ;;  %749 = vmatmul.f32.gmra.mxu3 %v691_v21 }
 0xf31   :  { %v729_v20 = vpop.f32.mrf.mxu0  ;;  %v799_v15 = vpop.f32.mrf.mxu1 }
 0xf32   :  { %v730_v19 = vadd.f32 %v961_v27, %v729_v20  ;;  %v800_v30 = vadd.f32 %v962_v28, %v799_v15 }
 0xf34   :  { %753 = vst [vmem:[%s1486_s10] sm:$0xff] %v730_v19 }
 0xf35   :  { %v735_v18 = vpop.f32.mrf.mxu2  ;;  %v744_v29 = vpop.f32.mrf.mxu3  ;;  %802 = vst [vmem:[%s1487_s11] sm:$0xff] %v800_v30 }
 0xf36   :  { %v736_v17 = vadd.f32 %v961_v27, %v735_v18  ;;  %v745_v16 = vadd.f32 %v961_v27, %v744_v29 }
 0xf38   :  { %755 = vst [vmem:[%s1486_s10 + $0x10] sm:$0xff] %v736_v17 }
 0xf39   :  { %758 = vst [vmem:[%s1486_s10 + $0x28] sm:$0xff] %v745_v16  ;;  %v732_v4 = vpop.f32.mrf.mxu0 }
 0xf3a   :  { %v733_v5 = vadd.f32 %v961_v27, %v732_v4 }
 0xf3c   :  { %754 = vst [vmem:[%s1486_s10 + $0x8] sm:$0xff] %v733_v5 }
 0xf3d   :  { %v738_v6 = vpop.f32.mrf.mxu2  ;;  %v747_v7 = vpop.f32.mrf.mxu3 }
 0xf3e   :  { %v739_v8 = vadd.f32 %v961_v27, %v738_v6  ;;  %v748_v9 = vadd.f32 %v961_v27, %v747_v7 }
 0xf40   :  { %756 = vst [vmem:[%s1486_s10 + $0x18] sm:$0xff] %v739_v8 }
 0xf41   :  { %759 = vst [vmem:[%s1486_s10 + $0x30] sm:$0xff] %v748_v9 }
 0xf45   :  { %v741_v10 = vpop.f32.mrf.mxu2  ;;  %v750_v11 = vpop.f32.mrf.mxu3 }
 0xf46   :  { %v742_v12 = vadd.f32 %v961_v27, %v741_v10  ;;  %v751_v14 = vadd.f32 %v961_v27, %v750_v11 }
 0xf48   :  { %757 = vst [vmem:[%s1486_s10 + $0x20] sm:$0xff] %v742_v12 }
 0xf49   :  { %760 = vst [vmem:[%s1486_s10 + $0x38] sm:$0xff] %v751_v14 }

</bundles_post_ra>
